<compile_context>
chip_gen: v7x
topology: tpu7x:2x2x1
jax: 0.10.0
libtpu: 0.0.40
codegen_flags: <defaults>
</compile_context>

<pallas_src>
import functools

import jax
import jax.numpy as jnp
from jax.experimental import pallas as pl
from jax.experimental.pallas import tpu as pltpu


# ----------------------------------------------------------------------------
# Fused kernel: one grid step = one batch element, both streams, all heads.
# ----------------------------------------------------------------------------
def _fused_diff_kernel(xv_ref, xi_ref, g_ref, b_ref, wq_ref, wkv_ref,
                       p1w_ref, p1b_ref, p2w_ref, p2b_ref, o_ref,
                       *, eps, scale, num_heads, head_dim, compute_dtype):
    N = xv_ref.shape[1]
    C = g_ref.shape[-1]

    xv = xv_ref[0].astype(jnp.float32)          # (N, C)
    xi = xi_ref[0].astype(jnp.float32)          # (N, C)
    xd = xv - xi                                # x_diff fused (no extra HBM pass)

    g = g_ref[...].astype(jnp.float32)          # (1, C)
    b = b_ref[...].astype(jnp.float32)          # (1, C)

    def layernorm(x):                           # stats always in f32
        m = jnp.mean(x, axis=-1, keepdims=True)
        v = jnp.mean(jnp.square(x - m), axis=-1, keepdims=True)
        return (x - m) * jax.lax.rsqrt(v + eps) * g + b

    xn_v = layernorm(xv)
    xn_i = layernorm(xi)
    xn_d = layernorm(xd)

    # One taller MXU push for both q projections: rows [0:N)=vis, [N:2N)=inf.
    xn_vi = jnp.concatenate([xn_v, xn_i], axis=0).astype(compute_dtype)   # (2N, C)
    wq = wq_ref[...].astype(compute_dtype)                                # (C, C)
    q_both = jnp.dot(xn_vi, wq, preferred_element_type=jnp.float32)       # (2N, C)

    # Only k/v of the diff stream are consumed downstream (q_diff unused).
    wkv = wkv_ref[...].astype(compute_dtype)                              # (C, 2C)
    kv_d = jnp.dot(xn_d.astype(compute_dtype), wkv,
                   preferred_element_type=jnp.float32)                    # (N, 2C)

    p1w = p1w_ref[...].astype(compute_dtype)    # (Dh, Dh)
    p2w = p2w_ref[...].astype(compute_dtype)    # (Dh, Dh)
    p1b = p1b_ref[...].astype(jnp.float32)      # (1, Dh)
    p2b = p2b_ref[...].astype(jnp.float32)      # (1, Dh)

    out_v_cols = []
    out_i_cols = []
    for h in range(num_heads):                  # static unrolled loop over heads
        lo = h * head_dim
        hi = lo + head_dim
        q2 = q_both[:, lo:hi]                                  # (2N, Dh) f32
        k_h = kv_d[:, lo:hi].astype(compute_dtype)             # (N, Dh)
        v_h = kv_d[:, C + lo:C + hi].astype(compute_dtype)     # (N, Dh)

        # Contract over Dh directly (no explicit k.T / XLU transpose).
        s = jax.lax.dot_general(
            q2.astype(compute_dtype), k_h,
            dimension_numbers=(((1,), (1,)), ((), ())),
            preferred_element_type=jnp.float32) * scale        # (2N, N)

        s = s - jnp.max(s, axis=-1, keepdims=True)
        p = jnp.exp(s)
        den = jnp.sum(p, axis=-1, keepdims=True)
        inv = pl.reciprocal(den, approx=True)                  # EUP slot
        inv = inv * (2.0 - den * inv)                          # Newton step -> f32 accuracy
        p = p * inv
        # attn_drop has p=0.0 -> identity (no dropout applied)

        ctx = jnp.dot(p.astype(compute_dtype), v_h,
                      preferred_element_type=jnp.float32)      # (2N, Dh)

        out_v_cols.append(
            jnp.dot(ctx[:N].astype(compute_dtype), p1w,
                    preferred_element_type=jnp.float32) + p1b + q2[:N])
        out_i_cols.append(
            jnp.dot(ctx[N:].astype(compute_dtype), p2w,
                    preferred_element_type=jnp.float32) + p2b + q2[N:])

    # Lane-dense packed output: [out_vis (N,C) | out_inf (N,C)] -> (N, 2C)=(8,128)
    packed = jnp.concatenate(out_v_cols + out_i_cols, axis=1)
    o_ref[0] = packed.astype(o_ref.dtype)


# ----------------------------------------------------------------------------
# Module forward (wrapper): one pallas_call, tiny slices only.
# ----------------------------------------------------------------------------
def difference_module1(x_vis, x_inf, params, num_heads, eps=1e-5,
                       compute_dtype=jnp.float32):
    B, N, C = x_vis.shape
    H = num_heads
    Dh = C // H
    scale = Dh ** (-0.5)

    # Only the q columns of qkv (shared for vis/inf) and the k/v columns of
    # qkv_diff are ever consumed by the module.
    w_q_t = params["w_qkv_t"][:, :C]              # (C, C)
    w_kv_diff_t = params["w_qkv_diff_t"][:, C:]   # (C, 2C)

    g2 = params["norm_g"].reshape(1, C)
    b2 = params["norm_b"].reshape(1, C)
    p1b = params["b_p1"].reshape(1, Dh)
    p2b = params["b_p2"].reshape(1, Dh)

    kernel = functools.partial(
        _fused_diff_kernel, eps=eps, scale=scale, num_heads=H,
        head_dim=Dh, compute_dtype=compute_dtype)

    packed = pl.pallas_call(
        kernel,
        out_shape=jax.ShapeDtypeStruct((B, N, 2 * C), x_vis.dtype),
        grid=(B,),
        in_specs=[
            pl.BlockSpec((1, N, C), lambda i: (i, 0, 0)),      # x_vis
            pl.BlockSpec((1, N, C), lambda i: (i, 0, 0)),      # x_inf
            pl.BlockSpec((1, C), lambda i: (0, 0)),            # norm gamma
            pl.BlockSpec((1, C), lambda i: (0, 0)),            # norm beta
            pl.BlockSpec((C, C), lambda i: (0, 0)),            # W_q^T (shared)
            pl.BlockSpec((C, 2 * C), lambda i: (0, 0)),        # W_kv_diff^T
            pl.BlockSpec((Dh, Dh), lambda i: (0, 0)),          # dif_proj1 W^T
            pl.BlockSpec((1, Dh), lambda i: (0, 0)),           # dif_proj1 b
            pl.BlockSpec((Dh, Dh), lambda i: (0, 0)),          # dif_proj2 W^T
            pl.BlockSpec((1, Dh), lambda i: (0, 0)),           # dif_proj2 b
        ],
        out_specs=pl.BlockSpec((1, N, 2 * C), lambda i: (i, 0, 0)),
        compiler_params=pltpu.CompilerParams(
            dimension_semantics=("parallel",)),                # B >= 2 feeds both v7x TCs
    )(x_vis, x_inf, g2, b2, w_q_t, w_kv_diff_t,
      params["w_p1_t"], p1b, params["w_p2_t"], p2b)

    return packed[:, :, :C], packed[:, :, C:]


# ----------------------------------------------------------------------------
# Pure-JAX reference for correctness checking
# ----------------------------------------------------------------------------
def reference(x_vis, x_inf, params, num_heads, eps=1e-5):
    B, N, C = x_vis.shape
    H = num_heads
    Dh = C // H
    scale = Dh ** (-0.5)

    def ln(x):
        m = jnp.mean(x, axis=-1, keepdims=True)
        v = jnp.mean(jnp.square(x - m), axis=-1, keepdims=True)
        return (x - m) / jnp.sqrt(v + eps) * params["norm_g"] + params["norm_b"]

    def qkv(x, w_t):
        y = ln(x) @ w_t
        y = y.reshape(B, N, 3, H, Dh).transpose(2, 0, 3, 1, 4)
        return y[0], y[1], y[2]

    q_d, k_d, v_d = qkv(x_vis - x_inf, params["w_qkv_diff_t"])
    q_v, _, _ = qkv(x_vis, params["w_qkv_t"])
    q_i, _, _ = qkv(x_inf, params["w_qkv_t"])

    def attn(q, pw_t, pb):
        s = jnp.einsum("bhnd,bhmd->bhnm", q, k_d) * scale
        p = jax.nn.softmax(s, axis=-1)
        ctx = jnp.einsum("bhnm,bhmd->bhnd", p, v_d)
        out = ctx @ pw_t + pb + q
        return out.transpose(0, 2, 1, 3).reshape(B, N, C)

    return attn(q_v, params["w_p1_t"], params["b_p1"]), attn(
        q_i, params["w_p2_t"], params["b_p2"])


# ----------------------------------------------------------------------------
if __name__ == "__main__":
    # small shapes consistent with the module: dim=64, num_heads=4, seq=8
    B, N, C, H = 2, 8, 64, 4
    Dh = C // H

    key = jax.random.PRNGKey(0)
    ks = jax.random.split(key, 8)

    x_vis = jax.random.normal(ks[0], (B, N, C), jnp.float32)
    x_inf = jax.random.normal(ks[1], (B, N, C), jnp.float32)

    # deterministic synthetic parameters (PyTorch Linear weight is (out, in);
    # pre-transposed so kernels compute x @ W^T as x @ w_t)
    params = {
        "w_qkv_t": (0.02 * jax.random.normal(ks[2], (3 * C, C), jnp.float32)).T,
        "w_qkv_diff_t": (0.02 * jax.random.normal(ks[3], (3 * C, C), jnp.float32)).T,
        "w_p1_t": (0.1 * jax.random.normal(ks[4], (Dh, Dh), jnp.float32)).T,
        "b_p1": 0.1 * jax.random.normal(ks[5], (Dh,), jnp.float32),
        "w_p2_t": (0.1 * jax.random.normal(ks[6], (Dh, Dh), jnp.float32)).T,
        "b_p2": 0.1 * jax.random.normal(ks[7], (Dh,), jnp.float32),
        "norm_g": jnp.ones((C,), jnp.float32),   # nn.LayerNorm default init
        "norm_b": jnp.zeros((C,), jnp.float32),
    }

    ref_vis, ref_inf = reference(x_vis, x_inf, params, num_heads=H)

    # f32 MXU path (v5e-friendly, strict check)
    out_vis, out_inf = difference_module1(x_vis, x_inf, params, num_heads=H)
    jax.block_until_ready((out_vis, out_inf))
    assert out_vis.shape == (B, N, C) and out_inf.shape == (B, N, C)
    assert jnp.allclose(out_vis, ref_vis, atol=5e-4, rtol=5e-4)
    assert jnp.allclose(out_inf, ref_inf, atol=5e-4, rtol=5e-4)

    # bf16 MXU-operand path (v6e/v7x); LN stats / softmax / accumulation stay f32.
    out_vis_bf, out_inf_bf = difference_module1(
        x_vis, x_inf, params, num_heads=H, compute_dtype=jnp.bfloat16)
    jax.block_until_ready((out_vis_bf, out_inf_bf))
    assert jnp.allclose(out_vis_bf, ref_vis, atol=5e-2, rtol=5e-2)
    assert jnp.allclose(out_inf_bf, ref_inf, atol=5e-2, rtol=5e-2)

    print("KERNEL_OK")
</pallas_src>

<mosaic_0001>
module attributes {stable_mosaic.version = 11 : i64} {
  func.func @_fused_diff_kernel(%arg0: i32, %arg1: memref<1x8x64xf32, #tpu.memory_space<vmem>>, %arg2: memref<1x8x64xf32, #tpu.memory_space<vmem>>, %arg3: memref<1x64xf32, #tpu.memory_space<vmem>>, %arg4: memref<1x64xf32, #tpu.memory_space<vmem>>, %arg5: memref<64x64xf32, #tpu.memory_space<vmem>>, %arg6: memref<64x128xf32, #tpu.memory_space<vmem>>, %arg7: memref<16x16xf32, #tpu.memory_space<vmem>>, %arg8: memref<1x16xf32, #tpu.memory_space<vmem>>, %arg9: memref<16x16xf32, #tpu.memory_space<vmem>>, %arg10: memref<1x16xf32, #tpu.memory_space<vmem>>, %arg11: memref<1x8x128xf32, #tpu.memory_space<vmem>>) attributes {dimension_semantics = [#tpu.dimension_semantics<parallel>], iteration_bounds = array<i64: 2>, scalar_prefetch = 0 : i64, scratch_operands = 0 : i64, tpu.core_type = #tpu.core_type<tc>, window_params = [{transform_indices = @transform_0, window_bounds = array<i64: 1, 8, 64>}, {transform_indices = @transform_1, window_bounds = array<i64: 1, 8, 64>}, {pipeline_mode = #tpu.pipeline_mode<synchronous>, transform_indices = @transform_2, window_bounds = array<i64: 1, 64>}, {pipeline_mode = #tpu.pipeline_mode<synchronous>, transform_indices = @transform_3, window_bounds = array<i64: 1, 64>}, {pipeline_mode = #tpu.pipeline_mode<synchronous>, transform_indices = @transform_4, window_bounds = array<i64: 64, 64>}, {pipeline_mode = #tpu.pipeline_mode<synchronous>, transform_indices = @transform_5, window_bounds = array<i64: 64, 128>}, {pipeline_mode = #tpu.pipeline_mode<synchronous>, transform_indices = @transform_6, window_bounds = array<i64: 16, 16>}, {pipeline_mode = #tpu.pipeline_mode<synchronous>, transform_indices = @transform_7, window_bounds = array<i64: 1, 16>}, {pipeline_mode = #tpu.pipeline_mode<synchronous>, transform_indices = @transform_8, window_bounds = array<i64: 16, 16>}, {pipeline_mode = #tpu.pipeline_mode<synchronous>, transform_indices = @transform_9, window_bounds = array<i64: 1, 16>}, {transform_indices = @transform_10, window_bounds = array<i64: 1, 8, 128>}]} {
    %c0 = arith.constant 0 : index
    %c0_0 = arith.constant 0 : index
    %c0_1 = arith.constant 0 : index
    %0 = vector.load %arg1[%c0, %c0_0, %c0_1] : memref<1x8x64xf32, #tpu.memory_space<vmem>>, vector<1x8x64xf32>
    %1 = vector.shape_cast %0 : vector<1x8x64xf32> to vector<8x64xf32>
    %c0_2 = arith.constant 0 : index
    %c0_3 = arith.constant 0 : index
    %c0_4 = arith.constant 0 : index
    %2 = vector.load %arg2[%c0_2, %c0_3, %c0_4] : memref<1x8x64xf32, #tpu.memory_space<vmem>>, vector<1x8x64xf32>
    %3 = vector.shape_cast %2 : vector<1x8x64xf32> to vector<8x64xf32>
    %4 = arith.subf %1, %3 : vector<8x64xf32>
    %c0_5 = arith.constant 0 : index
    %c0_6 = arith.constant 0 : index
    %5 = vector.load %arg3[%c0_5, %c0_6] : memref<1x64xf32, #tpu.memory_space<vmem>>, vector<1x64xf32>
    %c0_7 = arith.constant 0 : index
    %c0_8 = arith.constant 0 : index
    %6 = vector.load %arg4[%c0_7, %c0_8] : memref<1x64xf32, #tpu.memory_space<vmem>>, vector<1x64xf32>
    %cst = arith.constant dense<0.000000e+00> : vector<8xf32>
    %7 = vector.multi_reduction <add>, %1, %cst [1] : vector<8x64xf32> to vector<8xf32>
    %8 = vector.shape_cast %7 : vector<8xf32> to vector<8x1xf32>
    %cst_9 = arith.constant 6.400000e+01 : f32
    %9 = vector.broadcast %cst_9 : f32 to vector<8x1xf32>
    %10 = arith.divf %8, %9 : vector<8x1xf32>
    %11 = vector.broadcast %10 : vector<8x1xf32> to vector<8x64xf32>
    %12 = arith.subf %1, %11 : vector<8x64xf32>
    %13 = arith.mulf %12, %12 : vector<8x64xf32>
    %cst_10 = arith.constant dense<0.000000e+00> : vector<8xf32>
    %14 = vector.multi_reduction <add>, %13, %cst_10 [1] : vector<8x64xf32> to vector<8xf32>
    %15 = vector.shape_cast %14 : vector<8xf32> to vector<8x1xf32>
    %cst_11 = arith.constant 6.400000e+01 : f32
    %16 = vector.broadcast %cst_11 : f32 to vector<8x1xf32>
    %17 = arith.divf %15, %16 : vector<8x1xf32>
    %18 = vector.broadcast %10 : vector<8x1xf32> to vector<8x64xf32>
    %19 = arith.subf %1, %18 : vector<8x64xf32>
    %cst_12 = arith.constant 9.99999974E-6 : f32
    %20 = vector.broadcast %cst_12 : f32 to vector<8x1xf32>
    %21 = arith.addf %17, %20 : vector<8x1xf32>
    %22 = math.rsqrt %21 : vector<8x1xf32>
    %23 = vector.broadcast %22 : vector<8x1xf32> to vector<8x64xf32>
    %24 = arith.mulf %19, %23 : vector<8x64xf32>
    %25 = vector.broadcast %5 : vector<1x64xf32> to vector<8x64xf32>
    %26 = arith.mulf %24, %25 : vector<8x64xf32>
    %27 = vector.broadcast %6 : vector<1x64xf32> to vector<8x64xf32>
    %28 = arith.addf %26, %27 : vector<8x64xf32>
    %cst_13 = arith.constant dense<0.000000e+00> : vector<8xf32>
    %29 = vector.multi_reduction <add>, %3, %cst_13 [1] : vector<8x64xf32> to vector<8xf32>
    %30 = vector.shape_cast %29 : vector<8xf32> to vector<8x1xf32>
    %cst_14 = arith.constant 6.400000e+01 : f32
    %31 = vector.broadcast %cst_14 : f32 to vector<8x1xf32>
    %32 = arith.divf %30, %31 : vector<8x1xf32>
    %33 = vector.broadcast %32 : vector<8x1xf32> to vector<8x64xf32>
    %34 = arith.subf %3, %33 : vector<8x64xf32>
    %35 = arith.mulf %34, %34 : vector<8x64xf32>
    %cst_15 = arith.constant dense<0.000000e+00> : vector<8xf32>
    %36 = vector.multi_reduction <add>, %35, %cst_15 [1] : vector<8x64xf32> to vector<8xf32>
    %37 = vector.shape_cast %36 : vector<8xf32> to vector<8x1xf32>
    %cst_16 = arith.constant 6.400000e+01 : f32
    %38 = vector.broadcast %cst_16 : f32 to vector<8x1xf32>
    %39 = arith.divf %37, %38 : vector<8x1xf32>
    %40 = vector.broadcast %32 : vector<8x1xf32> to vector<8x64xf32>
    %41 = arith.subf %3, %40 : vector<8x64xf32>
    %cst_17 = arith.constant 9.99999974E-6 : f32
    %42 = vector.broadcast %cst_17 : f32 to vector<8x1xf32>
    %43 = arith.addf %39, %42 : vector<8x1xf32>
    %44 = math.rsqrt %43 : vector<8x1xf32>
    %45 = vector.broadcast %44 : vector<8x1xf32> to vector<8x64xf32>
    %46 = arith.mulf %41, %45 : vector<8x64xf32>
    %47 = vector.broadcast %5 : vector<1x64xf32> to vector<8x64xf32>
    %48 = arith.mulf %46, %47 : vector<8x64xf32>
    %49 = vector.broadcast %6 : vector<1x64xf32> to vector<8x64xf32>
    %50 = arith.addf %48, %49 : vector<8x64xf32>
    %cst_18 = arith.constant dense<0.000000e+00> : vector<8xf32>
    %51 = vector.multi_reduction <add>, %4, %cst_18 [1] : vector<8x64xf32> to vector<8xf32>
    %52 = vector.shape_cast %51 : vector<8xf32> to vector<8x1xf32>
    %cst_19 = arith.constant 6.400000e+01 : f32
    %53 = vector.broadcast %cst_19 : f32 to vector<8x1xf32>
    %54 = arith.divf %52, %53 : vector<8x1xf32>
    %55 = vector.broadcast %54 : vector<8x1xf32> to vector<8x64xf32>
    %56 = arith.subf %4, %55 : vector<8x64xf32>
    %57 = arith.mulf %56, %56 : vector<8x64xf32>
    %cst_20 = arith.constant dense<0.000000e+00> : vector<8xf32>
    %58 = vector.multi_reduction <add>, %57, %cst_20 [1] : vector<8x64xf32> to vector<8xf32>
    %59 = vector.shape_cast %58 : vector<8xf32> to vector<8x1xf32>
    %cst_21 = arith.constant 6.400000e+01 : f32
    %60 = vector.broadcast %cst_21 : f32 to vector<8x1xf32>
    %61 = arith.divf %59, %60 : vector<8x1xf32>
    %62 = vector.broadcast %54 : vector<8x1xf32> to vector<8x64xf32>
    %63 = arith.subf %4, %62 : vector<8x64xf32>
    %cst_22 = arith.constant 9.99999974E-6 : f32
    %64 = vector.broadcast %cst_22 : f32 to vector<8x1xf32>
    %65 = arith.addf %61, %64 : vector<8x1xf32>
    %66 = math.rsqrt %65 : vector<8x1xf32>
    %67 = vector.broadcast %66 : vector<8x1xf32> to vector<8x64xf32>
    %68 = arith.mulf %63, %67 : vector<8x64xf32>
    %69 = vector.broadcast %5 : vector<1x64xf32> to vector<8x64xf32>
    %70 = arith.mulf %68, %69 : vector<8x64xf32>
    %71 = vector.broadcast %6 : vector<1x64xf32> to vector<8x64xf32>
    %72 = arith.addf %70, %71 : vector<8x64xf32>
    %73 = tpu.concatenate %28, %50 in 0 : vector<8x64xf32>, vector<8x64xf32> -> vector<16x64xf32>
    %c0_23 = arith.constant 0 : index
    %c0_24 = arith.constant 0 : index
    %74 = vector.load %arg5[%c0_23, %c0_24] : memref<64x64xf32, #tpu.memory_space<vmem>>, vector<64x64xf32>
    %cst_25 = arith.constant dense<0.000000e+00> : vector<16x64xf32>
    %75 = tpu.matmul %73, %74, %cst_25 {dimension_numbers = #tpu.dot_dimension_numbers<[1], [0], [0], [1], [0, 0, 1, 1], [], []>} : vector<16x64xf32>, vector<64x64xf32>, vector<16x64xf32> -> vector<16x64xf32>
    %c0_26 = arith.constant 0 : index
    %c0_27 = arith.constant 0 : index
    %76 = vector.load %arg6[%c0_26, %c0_27] : memref<64x128xf32, #tpu.memory_space<vmem>>, vector<64x128xf32>
    %cst_28 = arith.constant dense<0.000000e+00> : vector<8x128xf32>
    %77 = tpu.matmul %72, %76, %cst_28 {dimension_numbers = #tpu.dot_dimension_numbers<[1], [0], [0], [1], [0, 0, 1, 1], [], []>} : vector<8x64xf32>, vector<64x128xf32>, vector<8x128xf32> -> vector<8x128xf32>
    %c0_29 = arith.constant 0 : index
    %c0_30 = arith.constant 0 : index
    %78 = vector.load %arg7[%c0_29, %c0_30] : memref<16x16xf32, #tpu.memory_space<vmem>>, vector<16x16xf32>
    %c0_31 = arith.constant 0 : index
    %c0_32 = arith.constant 0 : index
    %79 = vector.load %arg9[%c0_31, %c0_32] : memref<16x16xf32, #tpu.memory_space<vmem>>, vector<16x16xf32>
    %c0_33 = arith.constant 0 : index
    %c0_34 = arith.constant 0 : index
    %80 = vector.load %arg8[%c0_33, %c0_34] : memref<1x16xf32, #tpu.memory_space<vmem>>, vector<1x16xf32>
    %c0_35 = arith.constant 0 : index
    %c0_36 = arith.constant 0 : index
    %81 = vector.load %arg10[%c0_35, %c0_36] : memref<1x16xf32, #tpu.memory_space<vmem>>, vector<1x16xf32>
    %82 = vector.extract_strided_slice %75 {offsets = [0, 0], sizes = [16, 16], strides = [1, 1]} : vector<16x64xf32> to vector<16x16xf32>
    %83 = vector.extract_strided_slice %77 {offsets = [0, 0], sizes = [8, 16], strides = [1, 1]} : vector<8x128xf32> to vector<8x16xf32>
    %84 = vector.extract_strided_slice %77 {offsets = [0, 64], sizes = [8, 16], strides = [1, 1]} : vector<8x128xf32> to vector<8x16xf32>
    %cst_37 = arith.constant dense<0.000000e+00> : vector<16x8xf32>
    %85 = tpu.matmul %82, %83, %cst_37 {dimension_numbers = #tpu.dot_dimension_numbers<[1], [1], [0], [0], [0, 0, 1, 0], [], []>} : vector<16x16xf32>, vector<8x16xf32>, vector<16x8xf32> -> vector<16x8xf32>
    %cst_38 = arith.constant 2.500000e-01 : f32
    %86 = vector.broadcast %cst_38 : f32 to vector<16x8xf32>
    %87 = arith.mulf %85, %86 : vector<16x8xf32>
    %cst_39 = arith.constant dense<0xFF800000> : vector<16xf32>
    %88 = vector.multi_reduction <maximumf>, %87, %cst_39 [1] : vector<16x8xf32> to vector<16xf32>
    %89 = vector.shape_cast %88 : vector<16xf32> to vector<16x1xf32>
    %90 = vector.broadcast %89 : vector<16x1xf32> to vector<16x8xf32>
    %91 = arith.subf %87, %90 : vector<16x8xf32>
    %92 = math.exp %91 : vector<16x8xf32>
    %cst_40 = arith.constant dense<0.000000e+00> : vector<16xf32>
    %93 = vector.multi_reduction <add>, %92, %cst_40 [1] : vector<16x8xf32> to vector<16xf32>
    %94 = vector.shape_cast %93 : vector<16xf32> to vector<16x1xf32>
    %95 = tpu.reciprocal %94 {approx = true} : vector<16x1xf32> -> vector<16x1xf32>
    %96 = arith.mulf %94, %95 : vector<16x1xf32>
    %cst_41 = arith.constant 2.000000e+00 : f32
    %97 = vector.broadcast %cst_41 : f32 to vector<16x1xf32>
    %98 = arith.subf %97, %96 : vector<16x1xf32>
    %99 = arith.mulf %95, %98 : vector<16x1xf32>
    %100 = vector.broadcast %99 : vector<16x1xf32> to vector<16x8xf32>
    %101 = arith.mulf %92, %100 : vector<16x8xf32>
    %cst_42 = arith.constant dense<0.000000e+00> : vector<16x16xf32>
    %102 = tpu.matmul %101, %84, %cst_42 {dimension_numbers = #tpu.dot_dimension_numbers<[1], [0], [0], [1], [0, 0, 1, 1], [], []>} : vector<16x8xf32>, vector<8x16xf32>, vector<16x16xf32> -> vector<16x16xf32>
    %103 = vector.extract_strided_slice %102 {offsets = [0, 0], sizes = [8, 16], strides = [1, 1]} : vector<16x16xf32> to vector<8x16xf32>
    %cst_43 = arith.constant dense<0.000000e+00> : vector<8x16xf32>
    %104 = tpu.matmul %103, %78, %cst_43 {dimension_numbers = #tpu.dot_dimension_numbers<[1], [0], [0], [1], [0, 0, 1, 1], [], []>} : vector<8x16xf32>, vector<16x16xf32>, vector<8x16xf32> -> vector<8x16xf32>
    %105 = vector.broadcast %80 : vector<1x16xf32> to vector<8x16xf32>
    %106 = arith.addf %104, %105 : vector<8x16xf32>
    %107 = vector.extract_strided_slice %82 {offsets = [0, 0], sizes = [8, 16], strides = [1, 1]} : vector<16x16xf32> to vector<8x16xf32>
    %108 = arith.addf %106, %107 : vector<8x16xf32>
    %109 = vector.extract_strided_slice %102 {offsets = [8, 0], sizes = [8, 16], strides = [1, 1]} : vector<16x16xf32> to vector<8x16xf32>
    %cst_44 = arith.constant dense<0.000000e+00> : vector<8x16xf32>
    %110 = tpu.matmul %109, %79, %cst_44 {dimension_numbers = #tpu.dot_dimension_numbers<[1], [0], [0], [1], [0, 0, 1, 1], [], []>} : vector<8x16xf32>, vector<16x16xf32>, vector<8x16xf32> -> vector<8x16xf32>
    %111 = vector.broadcast %81 : vector<1x16xf32> to vector<8x16xf32>
    %112 = arith.addf %110, %111 : vector<8x16xf32>
    %113 = vector.extract_strided_slice %82 {offsets = [8, 0], sizes = [8, 16], strides = [1, 1]} : vector<16x16xf32> to vector<8x16xf32>
    %114 = arith.addf %112, %113 : vector<8x16xf32>
    %115 = vector.extract_strided_slice %75 {offsets = [0, 16], sizes = [16, 16], strides = [1, 1]} : vector<16x64xf32> to vector<16x16xf32>
    %116 = vector.extract_strided_slice %77 {offsets = [0, 16], sizes = [8, 16], strides = [1, 1]} : vector<8x128xf32> to vector<8x16xf32>
    %117 = vector.extract_strided_slice %77 {offsets = [0, 80], sizes = [8, 16], strides = [1, 1]} : vector<8x128xf32> to vector<8x16xf32>
    %cst_45 = arith.constant dense<0.000000e+00> : vector<16x8xf32>
    %118 = tpu.matmul %115, %116, %cst_45 {dimension_numbers = #tpu.dot_dimension_numbers<[1], [1], [0], [0], [0, 0, 1, 0], [], []>} : vector<16x16xf32>, vector<8x16xf32>, vector<16x8xf32> -> vector<16x8xf32>
    %cst_46 = arith.constant 2.500000e-01 : f32
    %119 = vector.broadcast %cst_46 : f32 to vector<16x8xf32>
    %120 = arith.mulf %118, %119 : vector<16x8xf32>
    %cst_47 = arith.constant dense<0xFF800000> : vector<16xf32>
    %121 = vector.multi_reduction <maximumf>, %120, %cst_47 [1] : vector<16x8xf32> to vector<16xf32>
    %122 = vector.shape_cast %121 : vector<16xf32> to vector<16x1xf32>
    %123 = vector.broadcast %122 : vector<16x1xf32> to vector<16x8xf32>
    %124 = arith.subf %120, %123 : vector<16x8xf32>
    %125 = math.exp %124 : vector<16x8xf32>
    %cst_48 = arith.constant dense<0.000000e+00> : vector<16xf32>
    %126 = vector.multi_reduction <add>, %125, %cst_48 [1] : vector<16x8xf32> to vector<16xf32>
    %127 = vector.shape_cast %126 : vector<16xf32> to vector<16x1xf32>
    %128 = tpu.reciprocal %127 {approx = true} : vector<16x1xf32> -> vector<16x1xf32>
    %129 = arith.mulf %127, %128 : vector<16x1xf32>
    %cst_49 = arith.constant 2.000000e+00 : f32
    %130 = vector.broadcast %cst_49 : f32 to vector<16x1xf32>
    %131 = arith.subf %130, %129 : vector<16x1xf32>
    %132 = arith.mulf %128, %131 : vector<16x1xf32>
    %133 = vector.broadcast %132 : vector<16x1xf32> to vector<16x8xf32>
    %134 = arith.mulf %125, %133 : vector<16x8xf32>
    %cst_50 = arith.constant dense<0.000000e+00> : vector<16x16xf32>
    %135 = tpu.matmul %134, %117, %cst_50 {dimension_numbers = #tpu.dot_dimension_numbers<[1], [0], [0], [1], [0, 0, 1, 1], [], []>} : vector<16x8xf32>, vector<8x16xf32>, vector<16x16xf32> -> vector<16x16xf32>
    %136 = vector.extract_strided_slice %135 {offsets = [0, 0], sizes = [8, 16], strides = [1, 1]} : vector<16x16xf32> to vector<8x16xf32>
    %cst_51 = arith.constant dense<0.000000e+00> : vector<8x16xf32>
    %137 = tpu.matmul %136, %78, %cst_51 {dimension_numbers = #tpu.dot_dimension_numbers<[1], [0], [0], [1], [0, 0, 1, 1], [], []>} : vector<8x16xf32>, vector<16x16xf32>, vector<8x16xf32> -> vector<8x16xf32>
    %138 = vector.broadcast %80 : vector<1x16xf32> to vector<8x16xf32>
    %139 = arith.addf %137, %138 : vector<8x16xf32>
    %140 = vector.extract_strided_slice %115 {offsets = [0, 0], sizes = [8, 16], strides = [1, 1]} : vector<16x16xf32> to vector<8x16xf32>
    %141 = arith.addf %139, %140 : vector<8x16xf32>
    %142 = vector.extract_strided_slice %135 {offsets = [8, 0], sizes = [8, 16], strides = [1, 1]} : vector<16x16xf32> to vector<8x16xf32>
    %cst_52 = arith.constant dense<0.000000e+00> : vector<8x16xf32>
    %143 = tpu.matmul %142, %79, %cst_52 {dimension_numbers = #tpu.dot_dimension_numbers<[1], [0], [0], [1], [0, 0, 1, 1], [], []>} : vector<8x16xf32>, vector<16x16xf32>, vector<8x16xf32> -> vector<8x16xf32>
    %144 = vector.broadcast %81 : vector<1x16xf32> to vector<8x16xf32>
    %145 = arith.addf %143, %144 : vector<8x16xf32>
    %146 = vector.extract_strided_slice %115 {offsets = [8, 0], sizes = [8, 16], strides = [1, 1]} : vector<16x16xf32> to vector<8x16xf32>
    %147 = arith.addf %145, %146 : vector<8x16xf32>
    %148 = vector.extract_strided_slice %75 {offsets = [0, 32], sizes = [16, 16], strides = [1, 1]} : vector<16x64xf32> to vector<16x16xf32>
    %149 = vector.extract_strided_slice %77 {offsets = [0, 32], sizes = [8, 16], strides = [1, 1]} : vector<8x128xf32> to vector<8x16xf32>
    %150 = vector.extract_strided_slice %77 {offsets = [0, 96], sizes = [8, 16], strides = [1, 1]} : vector<8x128xf32> to vector<8x16xf32>
    %cst_53 = arith.constant dense<0.000000e+00> : vector<16x8xf32>
    %151 = tpu.matmul %148, %149, %cst_53 {dimension_numbers = #tpu.dot_dimension_numbers<[1], [1], [0], [0], [0, 0, 1, 0], [], []>} : vector<16x16xf32>, vector<8x16xf32>, vector<16x8xf32> -> vector<16x8xf32>
    %cst_54 = arith.constant 2.500000e-01 : f32
    %152 = vector.broadcast %cst_54 : f32 to vector<16x8xf32>
    %153 = arith.mulf %151, %152 : vector<16x8xf32>
    %cst_55 = arith.constant dense<0xFF800000> : vector<16xf32>
    %154 = vector.multi_reduction <maximumf>, %153, %cst_55 [1] : vector<16x8xf32> to vector<16xf32>
    %155 = vector.shape_cast %154 : vector<16xf32> to vector<16x1xf32>
    %156 = vector.broadcast %155 : vector<16x1xf32> to vector<16x8xf32>
    %157 = arith.subf %153, %156 : vector<16x8xf32>
    %158 = math.exp %157 : vector<16x8xf32>
    %cst_56 = arith.constant dense<0.000000e+00> : vector<16xf32>
    %159 = vector.multi_reduction <add>, %158, %cst_56 [1] : vector<16x8xf32> to vector<16xf32>
    %160 = vector.shape_cast %159 : vector<16xf32> to vector<16x1xf32>
    %161 = tpu.reciprocal %160 {approx = true} : vector<16x1xf32> -> vector<16x1xf32>
    %162 = arith.mulf %160, %161 : vector<16x1xf32>
    %cst_57 = arith.constant 2.000000e+00 : f32
    %163 = vector.broadcast %cst_57 : f32 to vector<16x1xf32>
    %164 = arith.subf %163, %162 : vector<16x1xf32>
    %165 = arith.mulf %161, %164 : vector<16x1xf32>
    %166 = vector.broadcast %165 : vector<16x1xf32> to vector<16x8xf32>
    %167 = arith.mulf %158, %166 : vector<16x8xf32>
    %cst_58 = arith.constant dense<0.000000e+00> : vector<16x16xf32>
    %168 = tpu.matmul %167, %150, %cst_58 {dimension_numbers = #tpu.dot_dimension_numbers<[1], [0], [0], [1], [0, 0, 1, 1], [], []>} : vector<16x8xf32>, vector<8x16xf32>, vector<16x16xf32> -> vector<16x16xf32>
    %169 = vector.extract_strided_slice %168 {offsets = [0, 0], sizes = [8, 16], strides = [1, 1]} : vector<16x16xf32> to vector<8x16xf32>
    %cst_59 = arith.constant dense<0.000000e+00> : vector<8x16xf32>
    %170 = tpu.matmul %169, %78, %cst_59 {dimension_numbers = #tpu.dot_dimension_numbers<[1], [0], [0], [1], [0, 0, 1, 1], [], []>} : vector<8x16xf32>, vector<16x16xf32>, vector<8x16xf32> -> vector<8x16xf32>
    %171 = vector.broadcast %80 : vector<1x16xf32> to vector<8x16xf32>
    %172 = arith.addf %170, %171 : vector<8x16xf32>
    %173 = vector.extract_strided_slice %148 {offsets = [0, 0], sizes = [8, 16], strides = [1, 1]} : vector<16x16xf32> to vector<8x16xf32>
    %174 = arith.addf %172, %173 : vector<8x16xf32>
    %175 = vector.extract_strided_slice %168 {offsets = [8, 0], sizes = [8, 16], strides = [1, 1]} : vector<16x16xf32> to vector<8x16xf32>
    %cst_60 = arith.constant dense<0.000000e+00> : vector<8x16xf32>
    %176 = tpu.matmul %175, %79, %cst_60 {dimension_numbers = #tpu.dot_dimension_numbers<[1], [0], [0], [1], [0, 0, 1, 1], [], []>} : vector<8x16xf32>, vector<16x16xf32>, vector<8x16xf32> -> vector<8x16xf32>
    %177 = vector.broadcast %81 : vector<1x16xf32> to vector<8x16xf32>
    %178 = arith.addf %176, %177 : vector<8x16xf32>
    %179 = vector.extract_strided_slice %148 {offsets = [8, 0], sizes = [8, 16], strides = [1, 1]} : vector<16x16xf32> to vector<8x16xf32>
    %180 = arith.addf %178, %179 : vector<8x16xf32>
    %181 = vector.extract_strided_slice %75 {offsets = [0, 48], sizes = [16, 16], strides = [1, 1]} : vector<16x64xf32> to vector<16x16xf32>
    %182 = vector.extract_strided_slice %77 {offsets = [0, 48], sizes = [8, 16], strides = [1, 1]} : vector<8x128xf32> to vector<8x16xf32>
    %183 = vector.extract_strided_slice %77 {offsets = [0, 112], sizes = [8, 16], strides = [1, 1]} : vector<8x128xf32> to vector<8x16xf32>
    %cst_61 = arith.constant dense<0.000000e+00> : vector<16x8xf32>
    %184 = tpu.matmul %181, %182, %cst_61 {dimension_numbers = #tpu.dot_dimension_numbers<[1], [1], [0], [0], [0, 0, 1, 0], [], []>} : vector<16x16xf32>, vector<8x16xf32>, vector<16x8xf32> -> vector<16x8xf32>
    %cst_62 = arith.constant 2.500000e-01 : f32
    %185 = vector.broadcast %cst_62 : f32 to vector<16x8xf32>
    %186 = arith.mulf %184, %185 : vector<16x8xf32>
    %cst_63 = arith.constant dense<0xFF800000> : vector<16xf32>
    %187 = vector.multi_reduction <maximumf>, %186, %cst_63 [1] : vector<16x8xf32> to vector<16xf32>
    %188 = vector.shape_cast %187 : vector<16xf32> to vector<16x1xf32>
    %189 = vector.broadcast %188 : vector<16x1xf32> to vector<16x8xf32>
    %190 = arith.subf %186, %189 : vector<16x8xf32>
    %191 = math.exp %190 : vector<16x8xf32>
    %cst_64 = arith.constant dense<0.000000e+00> : vector<16xf32>
    %192 = vector.multi_reduction <add>, %191, %cst_64 [1] : vector<16x8xf32> to vector<16xf32>
    %193 = vector.shape_cast %192 : vector<16xf32> to vector<16x1xf32>
    %194 = tpu.reciprocal %193 {approx = true} : vector<16x1xf32> -> vector<16x1xf32>
    %195 = arith.mulf %193, %194 : vector<16x1xf32>
    %cst_65 = arith.constant 2.000000e+00 : f32
    %196 = vector.broadcast %cst_65 : f32 to vector<16x1xf32>
    %197 = arith.subf %196, %195 : vector<16x1xf32>
    %198 = arith.mulf %194, %197 : vector<16x1xf32>
    %199 = vector.broadcast %198 : vector<16x1xf32> to vector<16x8xf32>
    %200 = arith.mulf %191, %199 : vector<16x8xf32>
    %cst_66 = arith.constant dense<0.000000e+00> : vector<16x16xf32>
    %201 = tpu.matmul %200, %183, %cst_66 {dimension_numbers = #tpu.dot_dimension_numbers<[1], [0], [0], [1], [0, 0, 1, 1], [], []>} : vector<16x8xf32>, vector<8x16xf32>, vector<16x16xf32> -> vector<16x16xf32>
    %202 = vector.extract_strided_slice %201 {offsets = [0, 0], sizes = [8, 16], strides = [1, 1]} : vector<16x16xf32> to vector<8x16xf32>
    %cst_67 = arith.constant dense<0.000000e+00> : vector<8x16xf32>
    %203 = tpu.matmul %202, %78, %cst_67 {dimension_numbers = #tpu.dot_dimension_numbers<[1], [0], [0], [1], [0, 0, 1, 1], [], []>} : vector<8x16xf32>, vector<16x16xf32>, vector<8x16xf32> -> vector<8x16xf32>
    %204 = vector.broadcast %80 : vector<1x16xf32> to vector<8x16xf32>
    %205 = arith.addf %203, %204 : vector<8x16xf32>
    %206 = vector.extract_strided_slice %181 {offsets = [0, 0], sizes = [8, 16], strides = [1, 1]} : vector<16x16xf32> to vector<8x16xf32>
    %207 = arith.addf %205, %206 : vector<8x16xf32>
    %208 = vector.extract_strided_slice %201 {offsets = [8, 0], sizes = [8, 16], strides = [1, 1]} : vector<16x16xf32> to vector<8x16xf32>
    %cst_68 = arith.constant dense<0.000000e+00> : vector<8x16xf32>
    %209 = tpu.matmul %208, %79, %cst_68 {dimension_numbers = #tpu.dot_dimension_numbers<[1], [0], [0], [1], [0, 0, 1, 1], [], []>} : vector<8x16xf32>, vector<16x16xf32>, vector<8x16xf32> -> vector<8x16xf32>
    %210 = vector.broadcast %81 : vector<1x16xf32> to vector<8x16xf32>
    %211 = arith.addf %209, %210 : vector<8x16xf32>
    %212 = vector.extract_strided_slice %181 {offsets = [8, 0], sizes = [8, 16], strides = [1, 1]} : vector<16x16xf32> to vector<8x16xf32>
    %213 = arith.addf %211, %212 : vector<8x16xf32>
    %214 = tpu.concatenate %108, %141, %174, %207, %114, %147, %180, %213 in 1 : vector<8x16xf32>, vector<8x16xf32>, vector<8x16xf32>, vector<8x16xf32>, vector<8x16xf32>, vector<8x16xf32>, vector<8x16xf32>, vector<8x16xf32> -> vector<8x128xf32>
    %c0_69 = arith.constant 0 : index
    %c0_70 = arith.constant 0 : index
    %c0_71 = arith.constant 0 : index
    %215 = vector.load %arg11[%c0_69, %c0_70, %c0_71] : memref<1x8x128xf32, #tpu.memory_space<vmem>>, vector<1x8x128xf32>
    %216 = vector.shape_cast %215 : vector<1x8x128xf32> to vector<8x128xf32>
    %217 = vector.shape_cast %214 : vector<8x128xf32> to vector<1x8x128xf32>
    tpu.vector_store %arg11[%c0_69, %c0_70, %c0_71], %217 {strides = array<i32>} : memref<1x8x128xf32, #tpu.memory_space<vmem>>, vector<1x8x128xf32>,
    return
  }
  func.func @transform_0(%arg0: i32) -> (i32, i32, i32) {
    %c0_i32 = arith.constant 0 : i32
    %c0_i32_0 = arith.constant 0 : i32
    %c0_i32_1 = arith.constant 0 : i32
    return %arg0, %c0_i32, %c0_i32_0 : i32, i32, i32
  }
  func.func @transform_1(%arg0: i32) -> (i32, i32, i32) {
    %c0_i32 = arith.constant 0 : i32
    %c0_i32_0 = arith.constant 0 : i32
    %c0_i32_1 = arith.constant 0 : i32
    return %arg0, %c0_i32, %c0_i32_0 : i32, i32, i32
  }
  func.func @transform_2(%arg0: i32) -> (i32, i32) {
    %c0_i32 = arith.constant 0 : i32
    %c0_i32_0 = arith.constant 0 : i32
    %c0_i32_1 = arith.constant 0 : i32
    return %c0_i32, %c0_i32_0 : i32, i32
  }
  func.func @transform_3(%arg0: i32) -> (i32, i32) {
    %c0_i32 = arith.constant 0 : i32
    %c0_i32_0 = arith.constant 0 : i32
    %c0_i32_1 = arith.constant 0 : i32
    return %c0_i32, %c0_i32_0 : i32, i32
  }
  func.func @transform_4(%arg0: i32) -> (i32, i32) {
    %c0_i32 = arith.constant 0 : i32
    %c0_i32_0 = arith.constant 0 : i32
    %c0_i32_1 = arith.constant 0 : i32
    return %c0_i32, %c0_i32_0 : i32, i32
  }
  func.func @transform_5(%arg0: i32) -> (i32, i32) {
    %c0_i32 = arith.constant 0 : i32
    %c0_i32_0 = arith.constant 0 : i32
    %c0_i32_1 = arith.constant 0 : i32
    return %c0_i32, %c0_i32_0 : i32, i32
  }
  func.func @transform_6(%arg0: i32) -> (i32, i32) {
    %c0_i32 = arith.constant 0 : i32
    %c0_i32_0 = arith.constant 0 : i32
    %c0_i32_1 = arith.constant 0 : i32
    return %c0_i32, %c0_i32_0 : i32, i32
  }
  func.func @transform_7(%arg0: i32) -> (i32, i32) {
    %c0_i32 = arith.constant 0 : i32
    %c0_i32_0 = arith.constant 0 : i32
    %c0_i32_1 = arith.constant 0 : i32
    return %c0_i32, %c0_i32_0 : i32, i32
  }
  func.func @transform_8(%arg0: i32) -> (i32, i32) {
    %c0_i32 = arith.constant 0 : i32
    %c0_i32_0 = arith.constant 0 : i32
    %c0_i32_1 = arith.constant 0 : i32
    return %c0_i32, %c0_i32_0 : i32, i32
  }
  func.func @transform_9(%arg0: i32) -> (i32, i32) {
    %c0_i32 = arith.constant 0 : i32
    %c0_i32_0 = arith.constant 0 : i32
    %c0_i32_1 = arith.constant 0 : i32
    return %c0_i32, %c0_i32_0 : i32, i32
  }
  func.func @transform_10(%arg0: i32) -> (i32, i32, i32) {
    %c0_i32 = arith.constant 0 : i32
    %c0_i32_0 = arith.constant 0 : i32
    %c0_i32_1 = arith.constant 0 : i32
    return %arg0, %c0_i32, %c0_i32_0 : i32, i32, i32
  }
}

</mosaic_0001>

<bundles_post_ra>
// kernel: tpu_custom_call.1
= control target key start
LH: loop header
LB: loop body
LE: loop exit
PB: predicated region body
PF: predicated region fallthrough
CT: control target
= control target key end

     0   :  { %s3549_s0 = inlined_call_operand.hbm [shape: f32[2,8,64], index: 0, kind: input, shape index: {}]   ;;  %s3550_s1 = inlined_call_operand.hbm [shape: f32[2,8,64], index: 1, kind: input, shape index: {}]   ;;  %s3551_s2 = inlined_call_operand.vmem [shape: f32[1,64], index: 2, kind: input, shape index: {}]   ;;  %s3552_s3 = inlined_call_operand.vmem [shape: f32[1,64], index: 3, kind: input, shape index: {}]   ;;  %s3553_s4 = inlined_call_operand.hbm [shape: f32[64,64], index: 4, kind: input, shape index: {}]   ;;  %s3554_s5 = inlined_call_operand.hbm [shape: f32[64,128], index: 5, kind: input, shape index: {}]   ;;  %s3555_s6 = inlined_call_operand.vmem [shape: f32[16,16], index: 6, kind: input, shape index: {}]   ;;  %s3556_s7 = inlined_call_operand.vmem [shape: f32[1,16], index: 7, kind: input, shape index: {}]   ;;  %s3557_s8 = inlined_call_operand.hbm [shape: f32[16,16], index: 8, kind: input, shape index: {}]   ;;  %s3558_s9 = inlined_call_operand.vmem [shape: f32[1,16], index: 9, kind: input, shape index: {}]   ;;  %s3559_s10 = inlined_call_operand.hbm [shape: f32[2,8,128], index: 10, kind: output, shape index: {}]  }
   0x1   :  { %3567 = sst [smem:[#allocation19_spill]] %s3553_s4 }
   0x2   :  { %3568 = sst [smem:[#allocation20_spill]] %s3554_s5 }
   0x3   :  { %3569 = sst [smem:[#allocation21_spill]] %s3556_s7 }
   0x4   :  { %3570 = sst [smem:[#allocation22_spill]] %s3557_s8 }
   0x5   :  { %3571 = sst [smem:[#allocation23_spill]] %s3559_s10 }
   0x6   :  { %15 = vsyncpa [#allocation3], 0 }
   0x7   :  { %17 = vsyncpa [#allocation3 + $0x1], 0 }
   0x8   :  { %18 = vsyncpa [#allocation6], 0 }
   0x9   :  { %20 = vsyncpa [#allocation6 + $0x1], 0 }
   0xa   :  { %21 = vsyncpa [#allocation9], 0 }
   0xb   :  { %22 = vsyncpa [#allocation4], 0 }
   0xc   :  { %24 = vsyncpa [#allocation4 + $0x1], 0  ;;  %s3022_s13 = smov 0   ;;  %s3024_s14 = smov 0  }
   0xd   :  { %s3026_s15 = smov 0   ;;  %s3028_s16 = smov 0  }
   0xe LB: > { %3572 = sst [smem:[#allocation17_spill]] %s2935_s13  ;;  %s3043_s17 = sadd.s32 4294967295, %s2947_s16   ;;  %s2947_s16 = sphi %s3028_s16, %s3602_s16   ;;  %s2943_s15 = sphi %s3026_s15, %s3601_s15   ;;  %s2939_s14 = sphi %s3024_s14, %s3600_s14   ;;  %s2935_s13 = sphi %s3022_s13, %s3599_s13  }
   0xf   : > { %s2284_s18 = sadd.s32 4294967294, %s2947_s16   ;;  %p50_p0 = scmp.ne.s32.totalorder %s2939_s14, %s2935_s13 }
  0x10   : > { %p3560_p1 = scmp.eq.s32.totalorder %s3043_s17, 0  ;;  %p274_p3 = scmp.eq.s32.totalorder %s2284_s18, 1 }
  0x11   : > { %p2285_p5 = scmp.ge.s32.totalorder %s2947_s16, 1  ;;  %p281_p7 = scmp.lt.s32.totalorder %s2947_s16, 3 }
  0x12   : > { %p3052_p4 = por %p3560_p1, %p50_p0  ;;  %p3057_p6 = por %p274_p3, %p50_p0 }
  0x13   : > { %p3062_p8 = pnand %p2285_p5, %p281_p7  ;;  %s2949_s22 = smov [#allocation7]  }
  0x14   : > { %s3573_s19 = scalar_select %p3052_p4, 1, 0 }
  0x15   : > { %s3574_s20 = scalar_select %p3057_p6, 1, 0 }
  0x16   : > { %s3576_s21 = scalar_select %p3062_p8, 1, 0 }
  0x17   : > { %3575 = sst [smem:[#allocation18_spill]] %s3574_s20  ;;  %s299_s23 = sshll.u32 %s2949_s22, 4  ;;  %s3066_s23 = int_to_ptr.vmem [resolvable:$true] %s299_s23 }
  0x18   : > { %p2611_p9 = pneg %p3062_p8  ;;  %s2950_s25 = smov [#allocation8]  }
  0x19   : > { %s312_s26 = sshll.u32 %s2950_s25, 4  ;;  %s2951_s27 = smov [#allocation10]   ;;  %s3077_s26 = int_to_ptr.vmem [resolvable:$true] %s312_s26 }
  0x1a   : > { %p3073_p11 = pnand %p2611_p9, %p3560_p1  ;;  %s3079_s28 = sshll.u32 %s2951_s27, 4  ;;  %s332_s28 = int_to_ptr.vmem [resolvable:$true] %s3079_s28 }
  0x1b   : > { %s3578_s4 = sld [smem:[#allocation19_spill]] }
  0x1c   : > { %p3089_p13 = pneg %p3073_p11 }
  0x21   : > { %s2725_s11 = scalar_lea.hbm %s3578_s4, 1024 }
  0x22   : > { %p2726_p12 = scmp.ne.s32.totalorder %s3578_s4, %s2725_s11  ;;  %p2732_p5 = scmp.lt.u32.totalorder %s2725_s11, %s3578_s4 }
  0x24   : > { %p2728_p0 = pnand %p3089_p13, %p2726_p12 }
  0x26   : > { %p2729_p3 = pneg %p2728_p0 }
  0x28   : > { %p2734_p7 = pnand %p2732_p5, %p2729_p3 }
  0x2a   : > { %2737 = shalt.err (!%p2734_p7)
}
  0x2b   : > { %s2738_s29 = scalar_lea.vmem %s3066_s23, 1024  ;;  %p2746_p2 = scmp.lt.s32.totalorder %s3066_s23, %s3066_s23 }
  0x2c   : > { %p2739_p9 = scmp.ne.s32.totalorder %s3066_s23, %s2738_s29  ;;  %p2747_p6 = scmp.lt.s32.totalorder %s2738_s29, %s2738_s29 }
  0x2e   : > { %p2741_p10 = pnand %p2739_p9, %p3089_p13  ;;  %p2748_p12 = por %p2747_p6, %p2746_p2 }
  0x30   : > { %p2742_p1 = pneg %p2741_p10 }
  0x32   : > { %p2749_p0 = pnand %p2748_p12, %p2742_p1 }
  0x34   : > { %2752 = shalt.err (!%p2749_p0)
}
  0x35   : > { %s2952_s30 = smov 128   ;;  %s2953_s11 = smov 8  }
  0x36   : > { %2614 = dma.hbm_to_vmem [thread:$0]  (!%p3073_p11), %s3578_s4, 1024, %s3066_s23, [#allocation6], %s2952_s30, %s2952_s30, %s2953_s11  }
  0x37   : > { %s3580_s5 = sld [smem:[#allocation20_spill]] }
  0x3d   : > { %s2753_s29 = scalar_lea.hbm %s3580_s5, 1024 }
  0x3e   : > { %p2754_p1 = scmp.ne.s32.totalorder %s3580_s5, %s2753_s29  ;;  %p2760_p10 = scmp.lt.u32.totalorder %s2753_s29, %s3580_s5 }
  0x40   : > { %p2756_p2 = pnand %p2754_p1, %p3089_p13 }
  0x42   : > { %p2757_p6 = pneg %p2756_p2 }
  0x44   : > { %p2762_p3 = pnand %p2760_p10, %p2757_p6 }
  0x46   : > { %2765 = shalt.err (!%p2762_p3)
}
  0x47   : > { %s2766_s23 = scalar_lea.vmem %s3077_s26, 1024  ;;  %p2774_p12 = scmp.lt.s32.totalorder %s3077_s26, %s3077_s26 }
  0x48   : > { %p2767_p5 = scmp.ne.s32.totalorder %s3077_s26, %s2766_s23  ;;  %p2775_p0 = scmp.lt.s32.totalorder %s2766_s23, %s2766_s23 }
  0x4a   : > { %p2769_p7 = pnand %p2767_p5, %p3089_p13  ;;  %p2776_p1 = por %p2775_p0, %p2774_p12 }
  0x4c   : > { %p2770_p9 = pneg %p2769_p7 }
  0x4e   : > { %p2777_p2 = pnand %p2776_p1, %p2770_p9 }
  0x50   : > { %2780 = shalt.err (!%p2777_p2)
}
  0x51   : > { %2617 = dma.hbm_to_vmem [thread:$0]  (!%p3073_p11), %s3580_s5, 1024, %s3077_s26, [#allocation9], %s2952_s30, %s2952_s30, %s2953_s11  }
  0x52   : > { %s3581_s8 = sld [smem:[#allocation22_spill]] }
  0x58   : > { %s2781_s12 = scalar_lea.hbm %s3581_s8, 256 }
  0x59   : > { %p2782_p6 = scmp.ne.s32.totalorder %s3581_s8, %s2781_s12  ;;  %p2788_p5 = scmp.lt.u32.totalorder %s2781_s12, %s3581_s8 }
  0x5b   : > { %p2784_p10 = pnand %p2782_p6, %p3089_p13 }
  0x5d   : > { %p2785_p3 = pneg %p2784_p10 }
  0x5f   : > { %p2790_p7 = pnand %p2788_p5, %p2785_p3 }
  0x61   : > { %2793 = shalt.err (!%p2790_p7)
}
  0x62   : > { %s2794_s23 = scalar_lea.vmem %s332_s28, 256  ;;  %p2802_p1 = scmp.lt.s32.totalorder %s332_s28, %s332_s28 }
  0x63   : > { %p2795_p9 = scmp.ne.s32.totalorder %s332_s28, %s2794_s23  ;;  %p2803_p2 = scmp.lt.s32.totalorder %s2794_s23, %s2794_s23 }
  0x65   : > { %p2797_p12 = pnand %p2795_p9, %p3089_p13  ;;  %p2804_p4 = por %p2803_p2, %p2802_p1 }
  0x67   : > { %p2798_p0 = pneg %p2797_p12 }
  0x69   : > { %p2805_p8 = pnand %p2804_p4, %p2798_p0 }
  0x6b   : > { %2808 = shalt.err (!%p2805_p8)
}
  0x6c   : > { %2620 = dma.hbm_to_vmem [thread:$0]  (!%p3073_p11), %s3581_s8, 256, %s332_s28, [#allocation9], %s2952_s30, %s2952_s30, %s2953_s11  }
  0x6d   : > { %s3162_s22 = sadd.s32 1, %s2947_s16   ;;  %s37_s10 = sadd.s32 1, %s2943_s15 }
  0x6e   : > { %s34_s24 = ssub.s32 %s2947_s16, %s3162_s22  ;;  %p44_p8 = scmp.ne.s32.totalorder %s2943_s15, %s2939_s14 }
  0x6f   : > { %p35_p4 = scmp.eq.s32.totalorder %s34_s24, 0  ;;  %p45_p13 = scmp.eq.s32.totalorder %s2947_s16, 0 }
  0x70   : > { %p2635_p6 = scmp.lt.s32.totalorder %s2947_s16, 2  ;;  %p3582_p3 = scmp.eq.s32.totalorder %s3043_s17, 1 }
  0x71   : > { %s3172_s13 = scalar_select %p35_p4, %s2943_s15, %s37_s10  }
  0x72   : > { %p46_p10 = por %p45_p13, %p44_p8  ;;  %p3176_p5 = por %p3582_p3, %p44_p8 }
  0x73   : > { %s348_s12 = sand.u32 1, %s2943_s15   ;;  %s2291_s18 = sshll.u32 %s2947_s16, 7 }
  0x74   : > { %s3583_s20 = scalar_select %p3176_p5, 1, 0 }
  0x75   : > { %s3182_s28 = sshll.u32 %s348_s12, 3  ;;  %s3187_s25 = scalar_lea.hbm %s3549_s0, %s2291_s18 }
  0x76   : > { %s352_s27 = scalar_lea.vmem [#allocation2], %s3182_s28  ;;  %p3190_p11 = pnand %p2635_p6, %p46_p10 }
  0x77   : > { %s359_s29 = sshll.u32 %s352_s27, 4  ;;  %s3199_s24 = scalar_lea.hbm %s3550_s1, %s2291_s18  ;;  %s3194_s29 = int_to_ptr.vmem [resolvable:$true] %s359_s29 }
  0x78   : > { %s349_s10 = scalar_lea.sflag [#allocation3], %s348_s12  ;;  %s2809_s30 = scalar_lea.hbm %s3187_s25, 128 }
  0x79   : > { %p2810_p7 = scmp.ne.s32.totalorder %s3187_s25, %s2809_s30  ;;  %p2811_p9 = pneg %p3190_p11 }
  0x7a   : > { %s2814_s4 = scalar_lea.hbm %s3549_s0, 256  ;;  %p2815_p1 = scmp.lt.u32.totalorder %s3187_s25, %s3549_s0 }
  0x7b   : > { %p2812_p12 = pnand %p2811_p9, %p2810_p7  ;;  %p2816_p2 = scmp.lt.u32.totalorder %s2814_s4, %s2809_s30 }
  0x7c   : > { %p2818_p8 = scmp.lt.u32.totalorder %s2809_s30, %s3187_s25 }
  0x7d   : > { %p2813_p0 = pneg %p2812_p12  ;;  %p2817_p4 = por %p2816_p2, %p2815_p1 }
  0x7f   : > { %p2819_p13 = por %p2818_p8, %p2817_p4 }
  0x81   : > { %p2820_p6 = pnand %p2819_p13, %p2813_p0 }
  0x83   : > { %2823 = shalt.err (!%p2820_p6)
}
  0x84   : > { %s2824_s12 = scalar_lea.vmem %s3194_s29, 128  ;;  %s2954_s18 = smov [#allocation2]  }
  0x85   : > { %p2825_p10 = scmp.ne.s32.totalorder %s3194_s29, %s2824_s12  ;;  %s2829_s26 = sshll.u32 %s2954_s18, 4  ;;  %s2830_s26 = int_to_ptr.vmem [resolvable:$false] %s2829_s26 }
  0x86   : > { %s2831_s5 = scalar_lea.vmem %s2830_s26, 256  ;;  %p2832_p12 = scmp.lt.s32.totalorder %s3194_s29, %s2830_s26 }
  0x87   : > { %p2827_p3 = pnand %p2825_p10, %p2811_p9  ;;  %p2833_p1 = scmp.lt.s32.totalorder %s2831_s5, %s2824_s12 }
  0x89   : > { %p2828_p7 = pneg %p2827_p3  ;;  %p2834_p2 = por %p2833_p1, %p2832_p12 }
  0x8b   : > { %p2835_p4 = pnand %p2834_p2, %p2828_p7 }
  0x8d   : > { %2838 = shalt.err (!%p2835_p4)
}
  0x8e   : > { %2624 = dma.hbm_to_vmem [thread:$0]  (!%p3190_p11), %s3187_s25, 128, %s3194_s29, %s349_s10  }
  0x8f   : > { %s366_s4 = sand.u32 1, %s2947_s16   ;;  %s370_s8 = scalar_lea.vmem [#allocation5], %s3182_s28 }
  0x90   : > { %s377_s7 = sshll.u32 %s370_s8, 4  ;;  %s367_s30 = scalar_lea.sflag [#allocation6], %s366_s4  ;;  %s378_s7 = int_to_ptr.vmem [resolvable:$true] %s377_s7 }
  0x91   : > { %s2839_s11 = scalar_lea.hbm %s3199_s24, 128  ;;  %s2844_s18 = scalar_lea.hbm %s3550_s1, 256 }
  0x92   : > { %p2840_p0 = scmp.ne.s32.totalorder %s3199_s24, %s2839_s11  ;;  %p2845_p6 = scmp.lt.u32.totalorder %s3199_s24, %s3550_s1 }
  0x93   : > { %p2846_p10 = scmp.lt.u32.totalorder %s2844_s18, %s2839_s11  ;;  %p2848_p7 = scmp.lt.u32.totalorder %s2839_s11, %s3199_s24 }
  0x94   : > { %p2842_p8 = pnand %p2840_p0, %p2811_p9 }
  0x95   : > { %p2847_p3 = por %p2846_p10, %p2845_p6 }
  0x96   : > { %p2843_p13 = pneg %p2842_p8 }
  0x97   : > { %p2849_p12 = por %p2848_p7, %p2847_p3 }
  0x99   : > { %p2850_p1 = pnand %p2849_p12, %p2843_p13 }
  0x9b   : > { %2853 = shalt.err (!%p2850_p1)
}
  0x9c   : > { %s2854_s28 = scalar_lea.vmem %s378_s7, 128  ;;  %s2955_s25 = smov [#allocation5]  }
  0x9d   : > { %p2855_p2 = scmp.ne.s32.totalorder %s378_s7, %s2854_s28  ;;  %s2859_s29 = sshll.u32 %s2955_s25, 4  ;;  %s2860_s29 = int_to_ptr.vmem [resolvable:$false] %s2859_s29 }
  0x9e   : > { %s2861_s10 = scalar_lea.vmem %s2860_s29, 256  ;;  %p2862_p8 = scmp.lt.s32.totalorder %s378_s7, %s2860_s29 }
  0x9f   : > { %p2857_p4 = pnand %p2855_p2, %p2811_p9  ;;  %p2863_p5 = scmp.lt.s32.totalorder %s2861_s10, %s2854_s28 }
  0xa1   : > { %p2858_p0 = pneg %p2857_p4  ;;  %p2864_p6 = por %p2863_p5, %p2862_p8 }
  0xa3   : > { %p2865_p10 = pnand %p2864_p6, %p2858_p0 }
  0xa5   : > { %2868 = shalt.err (!%p2865_p10)
}
  0xa6   : > { %2627 = dma.hbm_to_vmem [thread:$0]  (!%p3190_p11), %s3199_s24, 128, %s378_s7, %s367_s30  }
  0xa7   : > { %p3585_p13 = scmp.ne.s32.totalorder %s3576_s21, 0 }
  0xa8   : > { %s3250_s4 = sand.u32 (!%p3585_p13), 1, %s2939_s14   ;;  %p3586_p5 = scmp.ne.s32.totalorder (!%p3585_p13), %s3573_s19, 0 }
  0xa9   : > { %386 = sbr.rel (%p3585_p13) target bundleno = 4090 (0xffa), region = 60  ;;  %s3253_s8 = sshll.u32 (!%p3585_p13), %s3250_s4, 3 }
  0xaa   : > { %s389_s11 = scalar_lea.sflag (!%p3585_p13), [#allocation3], %s3250_s4  ;;  %s392_s27 = scalar_lea.vmem (!%p3585_p13), [#allocation2], %s3253_s8 }
  0xb0   : > { %2914 = dma.done.wait (%p3586_p5), %s389_s11, 128  }
  0xb1   : > { %2916 = vsyncadd (%p3586_p5), %s389_s11, 4294967168  ;;  %s397_s21 = sand.u32 1, %s3043_s17   ;;  %s401_s24 = scalar_lea.vmem [#allocation5], %s3253_s8 }
  0xb2   : > { %s398_s23 = scalar_lea.sflag [#allocation6], %s397_s21 }
  0xb3   : > { %2918 = dma.done.wait (%p3586_p5), %s398_s23, 128  }
  0xb4   : > { %2920 = vsyncadd (%p3586_p5), %s398_s23, 4294967168  ;;  %p3587_p11 = scmp.eq.s32.totalorder %s3043_s17, 0 }
  0xb6   : > { %2922 = dma.done.wait (%p3587_p11), [#allocation6], 1024   ;;  %p3588_p9 = pmov %p3587_p11 }
  0xb8   : > { %2924 = vsyncadd (%p3588_p9), [#allocation6], 4294966272  ;;  %p3589_p3 = pmov %p3588_p9 }
  0xba   : > { %2926 = dma.done.wait (%p3589_p3), [#allocation9], 1280   ;;  %p3590_p7 = pmov %p3589_p3 }
  0xbb   : > { %v455_v0 = vld [vmem:[%s392_s27] sm:$0xff]  ;;  %v456_v1 = vld [vmem:[%s401_s24] sm:$0xff]  ;;  %vm460_vm0 = vcmask 523264   ;;  %v2956_v24 = vmov 0.0|0.0   ;;  %vm2957_vm1 = vmmov 0   ;;  %v2958_v37 = vmov 0.0  }
  0xbc   : > { %2928 = vsyncadd (%p3590_p7), [#allocation9], 4294966016  ;;  %v457_v2 = vsub.f32 %v455_v0, %v456_v1  ;;  %v489_v3 = vsel %vm460_vm0, %v456_v1, 0.0  ;;  %v461_v5 = vsel %vm460_vm0, %v455_v0, 0.0  ;;  %v608_v21 = vld [vmem:[#allocation8] sm:$0xff]  ;;  %v609_v22 = vld [vmem:[#allocation8 + $0x8] sm:$0xff]  ;;  %2557 = vmatprep.subr.bf16.mxu1 %v2956_v24  ;;  %2442 = vmatprep.mubr.msk.f32.mxu1 %vm2957_vm1, %v2958_v37 }
  0xbd   : > { %490 = vadd.xlane.f32.xlu1 %v489_v3  ;;  %v2558_v23 = vpack.c.bf16 %v609_v22, %v608_v21  ;;  %v519_v25 = vld [vmem:[#allocation7] sm:$0xff]  ;;  %v520_v26 = vld [vmem:[#allocation7 + $0x8] sm:$0xff]  ;;  %v610_v27 = vld [vmem:[#allocation8 + $0x10] sm:$0xff]  ;;  %vm695_vm2 = vcmask 130048   ;;  %vm782_vm3 = vcmask 64512   ;;  %s2959_s25 = smov 112  }
  0xbe   : > { %v504_v4 = vsel %vm460_vm0, %v457_v2, 0.0  ;;  %v2541_v28 = vpack.c.bf16 %v520_v26, %v519_v25  ;;  %v611_v29 = vld [vmem:[#allocation8 + $0x18] sm:$0xff]  ;;  %v521_v30 = vld [vmem:[#allocation7 + $0x10] sm:$0xff]  ;;  %v612_v34 = vld [vmem:[#allocation8 + $0x20] sm:$0xff]  ;;  %s2960_s29 = smov 64   ;;  %s3591_s23 = sld [smem:[#allocation21_spill]] }
  0xbf   : > { %505 = vadd.xlane.f32.xlu0 %v504_v4  ;;  %2559 = vmatpush3.bf16.msra.mxu1 %v2558_v23  ;;  %v522_v31 = vld [vmem:[#allocation7 + $0x18] sm:$0xff]  ;;  %v2561_v32 = vpack.c.bf16 %v611_v29, %v610_v27  ;;  %v613_v35 = vld [vmem:[#allocation8 + $0x28] sm:$0xff]  ;;  %v523_v36 = vld [vmem:[#allocation7 + $0x20] sm:$0xff]  ;;  %s2961_s24 = smov 96   ;;  %s2962_s19 = smov 48   ;;  %vm2137_vm4 = vcmask 261120  }
  0xc0   : > { %2560 = vmatprep.subr.bf16.mxu1 %v2956_v24  ;;  %v2545_v33 = vpack.c.bf16 %v522_v31, %v521_v30  ;;  %2542 = vmatprep.subr.bf16.mxu0 %v2541_v28  ;;  %v524_v38 = vld [vmem:[#allocation7 + $0x28] sm:$0xff]  ;;  %v2564_v39 = vpack.c.bf16 %v613_v35, %v612_v34  ;;  %v614_v41 = vld [vmem:[#allocation8 + $0x30] sm:$0xff]  ;;  %v615_v42 = vld [vmem:[#allocation8 + $0x38] sm:$0xff]  ;;  %s2963_s7 = smov 80   ;;  %s2964_s30 = smov 32   ;;  %vm2139_vm5 = vcmask 392192  }
  0xc1   : > { %2544 = vmatpush3.bf16.msra.mxu0 %v2541_v28  ;;  %v2549_v40 = vpack.c.bf16 %v524_v38, %v523_v36  ;;  %v2567_v43 = vpack.c.bf16 %v615_v42, %v614_v41  ;;  %v525_v44 = vld [vmem:[#allocation7 + $0x30] sm:$0xff]  ;;  %v526_v45 = vld [vmem:[#allocation7 + $0x38] sm:$0xff]  ;;  %v2301_v57 = vld [vmem:[%s3551_s2] ss:$0 sm:$0xff]  ;;  %s2965_s12 = smov 16   ;;  %vm2142_vm6 = vcmask 654336  }
  0xc2   : > { %2546 = vmatprep.subr.bf16.mxu0 %v2545_v33  ;;  %v2553_v46 = vpack.c.bf16 %v526_v45, %v525_v44  ;;  %v2302_v59 = vld [vmem:[%s3552_s3] ss:$0 sm:$0xff]  ;;  %v690_v28 = vld [vmem:[%s3555_s6 + $0x8] sm:$0xff]  ;;  %vm2144_vm7 = vcmask 785408   ;;  %s2337_s18 = sshll.u32 %s3043_s17, 7  ;;  %s454_s26 = scalar_lea.vmem [#allocation11], %s3253_s8 }
  0xc3   : > { %462 = vadd.xlane.f32.xlu0 %v461_v5  ;;  %2562 = vmatpush3.bf16.msra.mxu1 %v2561_v32  ;;  %v689_v27 = vld [vmem:[%s3555_s6] sm:$0xff]  ;;  %s2163_s5 = sshll.u32 %s454_s26, 4  ;;  %vm2146_vm8 = vcmask 916480   ;;  %s2150_s17 = scalar_lea.sflag [#allocation4], %s3250_s4  ;;  %s3507_s5 = int_to_ptr.vmem [resolvable:$true] %s2163_s5 }
  0xc4   : > { %2563 = vmatprep.subr.bf16.mxu1 %v2956_v24  ;;  %v3338_v29 = vpack.c.bf16 %v690_v28, %v689_v27  ;;  %v691_v42 = vld [vmem:[#allocation10] sm:$0xff]  ;;  %s2869_s8 = scalar_lea.vmem %s3507_s5, 128  ;;  %p3593_p1 = scmp.ne.s32.totalorder %s3583_s20, 0 }
  0xc5   : > { %2548 = vmatpush3.bf16.msra.mxu0 %v2545_v33  ;;  %p2870_p12 = scmp.ne.s32.totalorder %s3507_s5, %s2869_s8  ;;  %s2966_s11 = smov [#allocation11]  }
  0xc6   : > { %2550 = vmatprep.subr.bf16.mxu0 %v2549_v40  ;;  %s2873_s27 = sshll.u32 %s2966_s11, 4  ;;  %s2874_s27 = int_to_ptr.vmem [resolvable:$false] %s2873_s27 }
  0xc7   : > { %2565 = vmatpush3.bf16.msra.mxu1 %v2564_v39  ;;  %p2871_p2 = pnand %p2870_p12, %p3593_p1  ;;  %s2875_s21 = scalar_lea.vmem %s2874_s27, 256 }
  0xc8   : > { %2566 = vmatprep.subr.bf16.mxu1 %v2956_v24  ;;  %p2876_p0 = scmp.lt.s32.totalorder %s3507_s5, %s2874_s27  ;;  %p2877_p8 = scmp.lt.s32.totalorder %s2875_s21, %s2869_s8 }
  0xc9   : > { %2552 = vmatpush3.bf16.msra.mxu0 %v2549_v40  ;;  %p2872_p4 = pneg %p2871_p2 }
  0xca   : > { %2554 = vmatprep.subr.bf16.mxu0 %v2553_v46  ;;  %p2878_p6 = por %p2877_p8, %p2876_p0 }
  0xcb   : > { %2568 = vmatpush3.bf16.msra.mxu1 %v2567_v43  ;;  %v692_v43 = vld [vmem:[#allocation10 + $0x8] sm:$0xff] }
  0xcc   : > { %p2879_p10 = pnand %p2878_p6, %p2872_p4 }
  0xcd   : > { %2556 = vmatpush3.bf16.msra.mxu0 %v2553_v46  ;;  %v3351_v46 = vpack.c.bf16 %v692_v43, %v691_v42 }
 0x14a   : > { %v491_v6 = vpop.xlane.xlu1 %490 }
 0x14b   : > { %v492_v7 = vmul.f32 0.015625, %v491_v6 }
 0x14c   : > { %v506_v8 = vpop.xlane.xlu0 %505 }
 0x14d   : > { %v507_v9 = vmul.f32 0.015625, %v506_v8  ;;  %v3278_v10 = vsub.f32 %v456_v1, %v492_v7 }
 0x14f   : > { %v3280_v11 = vsub.f32 %v457_v2, %v507_v9  ;;  %v494_v15 = vmul.f32 %v3278_v10, %v3278_v10 }
 0x150   : > { %v463_v12 = vpop.xlane.xlu0 %462 }
 0x151   : > { %v465_v13 = vmul.f32 0.015625, %v463_v12  ;;  %v509_v14 = vmul.f32 %v3280_v11, %v3280_v11  ;;  %v495_v18 = vsel %vm460_vm0, %v494_v15, 0.0 }
 0x153   : > { %v3286_v16 = vsub.f32 %v455_v0, %v465_v13  ;;  %v510_v17 = vsel %vm460_vm0, %v509_v14, 0.0 }
 0x154   : > { %511 = vadd.xlane.f32.xlu1 %v510_v17 }
 0x155   : > { %v467_v19 = vmul.f32 %v3286_v16, %v3286_v16 }
 0x157   : > { %v468_v20 = vsel %vm460_vm0, %v467_v19, 0.0 }
 0x158   : > { %496 = vadd.xlane.f32.xlu1 %v495_v18  ;;  %469 = vadd.xlane.f32.xlu0 %v468_v20 }
 0x1e1   : > { %v512_v47 = vpop.xlane.xlu1 %511 }
 0x1e2   : > { %v513_v48 = vmul.f32 0.015625, %v512_v47 }
 0x1e4   : > { %v514_v49 = vadd.f32 1e-05, %v513_v48 }
 0x1e5   : > { %v497_v50 = vpop.xlane.xlu1 %496  ;;  %v470_v51 = vpop.xlane.xlu0 %469 }
 0x1e6   : > { %2687 = vrsqrt.f32 %v514_v49  ;;  %v498_v52 = vmul.f32 0.015625, %v497_v50  ;;  %v471_v53 = vmul.f32 0.015625, %v470_v51 }
 0x1e8   : > { %v499_v54 = vadd.f32 1e-05, %v498_v52  ;;  %v472_v55 = vadd.f32 1e-05, %v471_v53  ;;  %v3376_v52 = vld [vmem:[%s3558_s9] ss:$0 sm:$0xff] }
 0x1e9   : > { %v3381_v53 = vld [vmem:[%s3591_s23] ss:$0 sm:$0xff] }
 0x1ea   : > { %2689 = vrsqrt.f32 %v499_v54 }
 0x1eb   : > { %2691 = vrsqrt.f32 %v472_v55 }
 0x1f0   : > { %v2688_v56 = vpop.eup %2687 }
 0x1f1   : > { %v516_v58 = vmul.f32 %v2688_v56, %v3280_v11 }
 0x1f3   : > { %v517_v60 = vmul.f32 %v2301_v57, %v516_v58 }
 0x1f4   : > { %v2690_v61 = vpop.eup %2689 }
 0x1f5   : > { %v2692_v62 = vpop.eup %2691  ;;  %v518_v63 = vadd.f32 %v2302_v59, %v517_v60  ;;  %v501_v0 = vmul.f32 %v2690_v61, %v3278_v10 }
 0x1f6   : > { %v474_v1 = vmul.f32 %v2692_v62, %v3286_v16 }
 0x1f7   : > { %2443 = vmatmul.mubr.msk.f32.vlgmr.msra.gmra.mrb[0].mxu1 %vm460_vm0, %v518_v63  ;;  %v502_v2 = vmul.f32 %v2301_v57, %v501_v0 }
 0x1f8   : > { %v481_v3 = vmul.f32 %v2301_v57, %v474_v1 }
 0x1f9   : > { %v503_v4 = vadd.f32 %v2302_v59, %v502_v2 }
 0x1fa   : > { %v488_v5 = vadd.f32 %v2302_v59, %v481_v3 }
 0x1fc   : > { %2423 = vmatprep.mubr.msk.f32.mxu0 %vm460_vm0, %v488_v5 }
 0x1fd   : > { %2424 = vmatmul.mubr.msk.f32.vlgmr.msra.gmra.mrb[0].mxu0 %vm460_vm0, %v503_v4 }
 0x2ca   : > { %v3311_v6 = vpop.f32.mrb[0].mxu1 }
 0x2cb   : > { %v2444_v7 = vpop.f32.mrb[1].mxu1  ;;  %2445 = vmatprep.subr.msk.mxu0 %vm695_vm2, %v3311_v6 }
 0x2cc   : > { %2446 = vmatpush3.xpose.msk.msra.mxu0 %vm695_vm2, %v3311_v6 }
 0x2cd   : > { %2569 = vmatprep.subr.bf16.mxu0 %v2956_v24 }
 0x2d0   : > { %v3318_v8 = vpop.f32.mrb[0].mxu0 }
 0x2d1   : > { %v3320_v9 = vpop.f32.mrb[1].mxu0 }
 0x2d2   : > { %2447 = vmatprep.mubr.msk.f32.mxu0 %vm695_vm2, %v3320_v9 }
 0x2d3   : > { %2448 = vmatmul.mubr.msk.f32.vlgmr.msra.gmra.mrb[2].mxu0 %vm695_vm2, %v3318_v8 }
 0x2d4   : > { %2459 = vmatprep.mubr.msk.f32.mxu0 %vm2957_vm1, %v2958_v37  ;;  %2571 = vmatpush3.bf16.msra.mxu0 %v3338_v29 }
 0x3a6   : > { %v2449_v10 = vpop.f32.mrb[2].mxu0 }
 0x3a7   : > { %v781_v11 = vmul.f32 0.25, %v2449_v10  ;;  %v771_v12 = vpop.f32.mrb[3].mxu0 }
 0x3a8   : > { %v780_v13 = vmul.f32 0.25, %v771_v12 }
 0x3a9   : > { %v786_v14 = vsel %vm782_vm3, %v781_v11, -inf }
 0x3aa   : > { %787 = vmax.xlane.f32.xlu1 %v786_v14  ;;  %v783_v15 = vsel %vm782_vm3, %v780_v13, -inf }
 0x3ab   : > { %784 = vmax.xlane.f32.xlu0 %v783_v15 }
 0x437   : > { %v788_v16 = vpop.xlane.xlu1 %787 }
 0x438   : > { %v790_v17 = vsub.f32 %v781_v11, %v788_v16  ;;  %v785_v18 = vpop.xlane.xlu0 %784 }
 0x439   : > { %v789_v19 = vsub.f32 %v780_v13, %v785_v18 }
 0x43a   : > { %v793_v20 = vmul.f32 1.442695, %v790_v17 }
 0x43b   : > { %v791_v21 = vmul.f32 1.442695, %v789_v19 }
 0x43c   : > { %2693 = vpow2.f32 %v793_v20 }
 0x43d   : > { %2695 = vpow2.f32 %v791_v21 }
 0x446   : > { %v2694_v22 = vpop.eup %2693 }
 0x447   : > { %v2696_v23 = vpop.eup %2695  ;;  %v798_v25 = vsel %vm782_vm3, %v2694_v22, 0.0 }
 0x448   : > { %799 = vadd.xlane.f32.xlu1 %v798_v25  ;;  %v795_v26 = vsel %vm782_vm3, %v2696_v23, 0.0 }
 0x449   : > { %796 = vadd.xlane.f32.xlu0 %v795_v26 }
 0x459   : > { %1059 = vrot.lane.b32.xlu1 %v3311_v6, %s2959_s25 }
 0x45d   : > { %1055 = vrot.lane.b32.xlu1 %v3320_v9, %s2959_s25 }
 0x45f   : > { %811 = vrot.lane.b32.xlu0 %v3311_v6, %s2960_s29 }
 0x461   : > { %1057 = vrot.lane.b32.xlu1 %v3318_v8, %s2959_s25 }
 0x4d5   : > { %v800_v30 = vpop.xlane.xlu1 %799 }
 0x4d6   : > { %2697 = vrcp.f32 %v800_v30  ;;  %v797_v31 = vpop.xlane.xlu0 %796 }
 0x4d7   : > { %2699 = vrcp.f32 %v797_v31 }
 0x4d9   : > { %v1060_v32 = vpop.permute.xlu1 %1059 }
 0x4da   : > { %2469 = vmatprep.subr.msk.mxu0 %vm695_vm2, %v1060_v32  ;;  %v812_v33 = vpop.permute.xlu0 %811 }
 0x4db   : > { %2450 = vmatprep.subr.mxu1 %v812_v33 }
 0x4dc   : > { %2451 = vmatpush3.msra.mxu1 %v812_v33 }
 0x4dd   : > { %2572 = vmatprep.subr.bf16.mxu1 %v2956_v24  ;;  %v3358_v48 = vpop.permute.xlu1 %1055 }
 0x4e0   : > { %v2698_v34 = vpop.eup %2697 }
 0x4e1   : > { %v2700_v35 = vpop.eup %2699  ;;  %v804_v36 = vmul.f32 %v2698_v34, %v800_v30  ;;  %v3366_v51 = vpop.permute.xlu1 %1057 }
 0x4e2   : > { %v803_v38 = vmul.f32 %v2700_v35, %v797_v31 }
 0x4e3   : > { %v806_v39 = vsub.f32 2.0, %v804_v36 }
 0x4e4   : > { %v805_v40 = vsub.f32 2.0, %v803_v38 }
 0x4e5   : > { %v808_v41 = vmul.f32 %v2698_v34, %v806_v39 }
 0x4e6   : > { %v807_v44 = vmul.f32 %v2700_v35, %v805_v40 }
 0x4e7   : > { %v810_v47 = vmul.f32 %v2694_v22, %v808_v41 }
 0x4e8   : > { %v809_v45 = vmul.f32 %v2696_v23, %v807_v44 }
 0x4ea   : > { %2452 = vmatprep.mubr.msk.f32.mxu1 %vm782_vm3, %v809_v45 }
 0x4eb   : > { %2453 = vmatmul.mubr.msk.f32.vlgmr.msra.gmra.mrb[2].mxu1 %vm782_vm3, %v810_v47 }
 0x4ec   : > { %2574 = vmatpush3.bf16.msra.mxu1 %v3351_v46  ;;  %2466 = vmatprep.mubr.msk.f32.mxu1 %vm2957_vm1, %v2958_v37 }
 0x5be   : > { %v2454_v49 = vpop.f32.mrb[2].mxu1 }
 0x5bf   : > { %v886_v50 = vpop.f32.mrb[3].mxu1  ;;  %2467 = vmatmul.mubr.msk.f32.vlgmr.msra.gmra.mrb[4].mxu1 %vm695_vm2, %v2454_v49 }
 0x5c0   : > { %2460 = vmatmul.mubr.msk.f32.vlgmr.msra.gmra.mrb[4].mxu0 %vm695_vm2, %v886_v50 }
 0x5c1   : > { %2470 = vmatpush3.xpose.msk.msra.mxu0 %vm695_vm2, %v1060_v32  ;;  %2471 = vmatprep.mubr.msk.f32.mxu0 %vm695_vm2, %v3358_v48 }
 0x5c2   : > { %2575 = vmatprep.subr.bf16.mxu0 %v2956_v24 }
 0x5c4   : > { %2472 = vmatmul.mubr.msk.f32.vlgmr.msra.gmra.mrb[6].mxu0 %vm695_vm2, %v3366_v51 }
 0x5c5   : > { %2577 = vmatpush3.bf16.msra.mxu0 %v3338_v29  ;;  %2483 = vmatprep.mubr.msk.f32.mxu0 %vm2957_vm1, %v2958_v37 }
 0x692   : > { %v1050_v54 = vpop.f32.mrb[4].mxu1 }
 0x693   : > { %v1051_v55 = vadd.f32 %v3376_v52, %v1050_v54  ;;  %v970_v56 = vpop.f32.mrb[4].mxu0  ;;  %v2468_v57 = vpop.f32.mrb[5].mxu1 }
 0x694   : > { %v971_v58 = vadd.f32 %v3381_v53, %v970_v56  ;;  %v2461_v59 = vpop.f32.mrb[5].mxu0 }
 0x695   : > { %v3386_v60 = vadd.f32 %v3318_v8, %v1051_v55 }
 0x696   : > { %v3389_v61 = vadd.f32 %v971_v58, %v3320_v9 }
 0x697   : > { %v2473_v62 = vpop.f32.mrb[6].mxu0 }
 0x698   : > { %v1143_v63 = vmul.f32 0.25, %v2473_v62  ;;  %v1133_v0 = vpop.f32.mrb[7].mxu0 }
 0x699   : > { %v1142_v1 = vmul.f32 0.25, %v1133_v0 }
 0x69a   : > { %v1147_v2 = vsel %vm782_vm3, %v1143_v63, -inf }
 0x69b   : > { %1148 = vmax.xlane.f32.xlu1 %v1147_v2  ;;  %v1144_v3 = vsel %vm782_vm3, %v1142_v1, -inf }
 0x69c   : > { %1145 = vmax.xlane.f32.xlu0 %v1144_v3 }
 0x6ac   : > { %1410 = vrot.lane.b32.xlu1 %v3311_v6, %s2961_s24 }
 0x6b0   : > { %1406 = vrot.lane.b32.xlu1 %v3320_v9, %s2961_s24 }
 0x6b4   : > { %1408 = vrot.lane.b32.xlu1 %v3318_v8, %s2961_s24 }
 0x728   : > { %v1149_v4 = vpop.xlane.xlu1 %1148 }
 0x729   : > { %v1151_v5 = vsub.f32 %v1143_v63, %v1149_v4  ;;  %v1146_v7 = vpop.xlane.xlu0 %1145 }
 0x72a   : > { %v1150_v10 = vsub.f32 %v1142_v1, %v1146_v7 }
 0x72b   : > { %v1154_v11 = vmul.f32 1.442695, %v1151_v5 }
 0x72c   : > { %v1152_v12 = vmul.f32 1.442695, %v1150_v10  ;;  %v1411_v13 = vpop.permute.xlu1 %1410 }
 0x72d   : > { %2493 = vmatprep.subr.msk.mxu0 %vm695_vm2, %v1411_v13 }
 0x72e   : > { %2701 = vpow2.f32 %v1152_v12 }
 0x72f   : > { %2703 = vpow2.f32 %v1154_v11 }
 0x730   : > { %v3410_v33 = vpop.permute.xlu1 %1406 }
 0x734   : > { %v3418_v36 = vpop.permute.xlu1 %1408 }
 0x738   : > { %v2702_v14 = vpop.eup %2701 }
 0x739   : > { %v1156_v15 = vsel %vm782_vm3, %v2702_v14, 0.0  ;;  %v2704_v16 = vpop.eup %2703 }
 0x73a   : > { %1157 = vadd.xlane.f32.xlu0 %v1156_v15  ;;  %v1159_v17 = vsel %vm782_vm3, %v2704_v16, 0.0 }
 0x73e   : > { %1160 = vadd.xlane.f32.xlu0 %v1159_v17 }
 0x754   : > { %1172 = vrot.lane.b32.xlu0 %v3311_v6, %s2962_s19 }
 0x7c7   : > { %v1158_v18 = vpop.xlane.xlu0 %1157 }
 0x7c8   : > { %2705 = vrcp.f32 %v1158_v18 }
 0x7cb   : > { %v1161_v19 = vpop.xlane.xlu0 %1160 }
 0x7cc   : > { %2707 = vrcp.f32 %v1161_v19 }
 0x7cf   : > { %v1173_v20 = vpop.permute.xlu0 %1172 }
 0x7d0   : > { %2474 = vmatprep.subr.mxu1 %v1173_v20 }
 0x7d1   : > { %2475 = vmatpush3.msra.mxu1 %v1173_v20 }
 0x7d2   : > { %v2706_v21 = vpop.eup %2705  ;;  %2578 = vmatprep.subr.bf16.mxu1 %v2956_v24 }
 0x7d3   : > { %v1164_v22 = vmul.f32 %v2706_v21, %v1158_v18 }
 0x7d5   : > { %v1166_v23 = vsub.f32 2.0, %v1164_v22 }
 0x7d6   : > { %v2708_v25 = vpop.eup %2707 }
 0x7d7   : > { %v1168_v26 = vmul.f32 %v2706_v21, %v1166_v23  ;;  %v1165_v27 = vmul.f32 %v2708_v25, %v1161_v19 }
 0x7d9   : > { %v1170_v28 = vmul.f32 %v2702_v14, %v1168_v26  ;;  %v1167_v30 = vsub.f32 2.0, %v1165_v27 }
 0x7db   : > { %v1169_v31 = vmul.f32 %v2708_v25, %v1167_v30  ;;  %2476 = vmatprep.mubr.msk.f32.mxu1 %vm782_vm3, %v1170_v28 }
 0x7dd   : > { %v1171_v32 = vmul.f32 %v2704_v16, %v1169_v31 }
 0x7df   : > { %2477 = vmatmul.mubr.msk.f32.vlgmr.msra.gmra.mrb[6].mxu1 %vm782_vm3, %v1171_v32 }
 0x7e0   : > { %2580 = vmatpush3.bf16.msra.mxu1 %v3351_v46  ;;  %2490 = vmatprep.mubr.msk.f32.mxu1 %vm2957_vm1, %v2958_v37 }
 0x8b2   : > { %v2478_v34 = vpop.f32.mrb[6].mxu1 }
 0x8b3   : > { %v1247_v35 = vpop.f32.mrb[7].mxu1  ;;  %2491 = vmatmul.mubr.msk.f32.vlgmr.msra.gmra.mrb[8].mxu1 %vm695_vm2, %v2478_v34 }
 0x8b4   : > { %2484 = vmatmul.mubr.msk.f32.vlgmr.msra.gmra.mrb[8].mxu0 %vm695_vm2, %v1247_v35 }
 0x8b5   : > { %2494 = vmatpush3.xpose.msk.msra.mxu0 %vm695_vm2, %v1411_v13  ;;  %2495 = vmatprep.mubr.msk.f32.mxu0 %vm695_vm2, %v3410_v33 }
 0x8b6   : > { %2581 = vmatprep.subr.bf16.mxu0 %v2956_v24 }
 0x8b8   : > { %2496 = vmatmul.mubr.msk.f32.vlgmr.msra.gmra.mrb[10].mxu0 %vm695_vm2, %v3418_v36 }
 0x8b9   : > { %2583 = vmatpush3.bf16.msra.mxu0 %v3338_v29  ;;  %2507 = vmatprep.mubr.msk.f32.mxu0 %vm2957_vm1, %v2958_v37 }
 0x986   : > { %v3425_v38 = vpop.f32.mrb[8].mxu1 }
 0x987   : > { %v3427_v39 = vpop.f32.mrb[8].mxu0  ;;  %v2492_v40 = vpop.f32.mrb[9].mxu1  ;;  %v1401_v35 = vadd.f32 %v3376_v52, %v3425_v38 }
 0x988   : > { %v2485_v41 = vpop.f32.mrb[9].mxu0 }
 0x989   : > { %v1405_v41 = vadd.f32 %v1401_v35, %v3366_v51 }
 0x98b   : > { %v2497_v42 = vpop.f32.mrb[10].mxu0 }
 0x98c   : > { %v1494_v43 = vmul.f32 0.25, %v2497_v42  ;;  %v1484_v44 = vpop.f32.mrb[11].mxu0 }
 0x98d   : > { %v1493_v45 = vmul.f32 0.25, %v1484_v44 }
 0x98e   : > { %v1498_v47 = vsel %vm782_vm3, %v1494_v43, -inf }
 0x98f   : > { %1499 = vmax.xlane.f32.xlu1 %v1498_v47  ;;  %v1495_v49 = vsel %vm782_vm3, %v1493_v45, -inf }
 0x990   : > { %1496 = vmax.xlane.f32.xlu0 %v1495_v49 }
 0x9a0   : > { %1761 = vrot.lane.b32.xlu1 %v3311_v6, %s2963_s7 }
 0x9a4   : > { %1757 = vrot.lane.b32.xlu1 %v3320_v9, %s2963_s7 }
 0x9a8   : > { %1759 = vrot.lane.b32.xlu1 %v3318_v8, %s2963_s7 }
 0xa1c   : > { %v1500_v50 = vpop.xlane.xlu1 %1499 }
 0xa1d   : > { %v1502_v54 = vsub.f32 %v1494_v43, %v1500_v50  ;;  %v1497_v55 = vpop.xlane.xlu0 %1496 }
 0xa1e   : > { %v1501_v56 = vsub.f32 %v1493_v45, %v1497_v55 }
 0xa1f   : > { %v1505_v57 = vmul.f32 1.442695, %v1502_v54 }
 0xa20   : > { %v1503_v58 = vmul.f32 1.442695, %v1501_v56  ;;  %v1762_v59 = vpop.permute.xlu1 %1761 }
 0xa21   : > { %2517 = vmatprep.subr.msk.mxu0 %vm695_vm2, %v1762_v59 }
 0xa22   : > { %2709 = vpow2.f32 %v1503_v58 }
 0xa23   : > { %2711 = vpow2.f32 %v1505_v57 }
 0xa24   : > { %v3448_v16 = vpop.permute.xlu1 %1757 }
 0xa28   : > { %v3456_v19 = vpop.permute.xlu1 %1759 }
 0xa2c   : > { %v2710_v62 = vpop.eup %2709 }
 0xa2d   : > { %v1507_v63 = vsel %vm782_vm3, %v2710_v62, 0.0  ;;  %v2712_v0 = vpop.eup %2711 }
 0xa2e   : > { %1508 = vadd.xlane.f32.xlu0 %v1507_v63  ;;  %v1510_v9 = vsel %vm782_vm3, %v2712_v0, 0.0 }
 0xa32   : > { %1511 = vadd.xlane.f32.xlu0 %v1510_v9 }
 0xa48   : > { %1523 = vrot.lane.b32.xlu0 %v3311_v6, %s2964_s30 }
 0xabb   : > { %v1509_v8 = vpop.xlane.xlu0 %1508 }
 0xabc   : > { %2713 = vrcp.f32 %v1509_v8 }
 0xabf   : > { %v1512_v1 = vpop.xlane.xlu0 %1511 }
 0xac0   : > { %2715 = vrcp.f32 %v1512_v1 }
 0xac3   : > { %v1524_v2 = vpop.permute.xlu0 %1523 }
 0xac4   : > { %2498 = vmatprep.subr.mxu1 %v1524_v2 }
 0xac5   : > { %2499 = vmatpush3.msra.mxu1 %v1524_v2 }
 0xac6   : > { %v2714_v3 = vpop.eup %2713  ;;  %2584 = vmatprep.subr.bf16.mxu1 %v2956_v24 }
 0xac7   : > { %v1515_v4 = vmul.f32 %v2714_v3, %v1509_v8 }
 0xac9   : > { %v1517_v5 = vsub.f32 2.0, %v1515_v4 }
 0xaca   : > { %v2716_v7 = vpop.eup %2715 }
 0xacb   : > { %v1519_v10 = vmul.f32 %v2714_v3, %v1517_v5  ;;  %v1516_v11 = vmul.f32 %v2716_v7, %v1512_v1 }
 0xacd   : > { %v1521_v12 = vmul.f32 %v2710_v62, %v1519_v10  ;;  %v1518_v13 = vsub.f32 2.0, %v1516_v11 }
 0xacf   : > { %v1520_v14 = vmul.f32 %v2716_v7, %v1518_v13  ;;  %2500 = vmatprep.mubr.msk.f32.mxu1 %vm782_vm3, %v1521_v12 }
 0xad1   : > { %v1522_v15 = vmul.f32 %v2712_v0, %v1520_v14 }
 0xad3   : > { %2501 = vmatmul.mubr.msk.f32.vlgmr.msra.gmra.mrb[10].mxu1 %vm782_vm3, %v1522_v15 }
 0xad4   : > { %2586 = vmatpush3.bf16.msra.mxu1 %v3351_v46  ;;  %2514 = vmatprep.mubr.msk.f32.mxu1 %vm2957_vm1, %v2958_v37 }
 0xba6   : > { %v2502_v17 = vpop.f32.mrb[10].mxu1 }
 0xba7   : > { %v1598_v18 = vpop.f32.mrb[11].mxu1  ;;  %2515 = vmatmul.mubr.msk.f32.vlgmr.msra.gmra.mrb[12].mxu1 %vm695_vm2, %v2502_v17 }
 0xba8   : > { %2508 = vmatmul.mubr.msk.f32.vlgmr.msra.gmra.mrb[12].mxu0 %vm695_vm2, %v1598_v18 }
 0xba9   : > { %2518 = vmatpush3.xpose.msk.msra.mxu0 %vm695_vm2, %v1762_v59  ;;  %2519 = vmatprep.mubr.msk.f32.mxu0 %vm695_vm2, %v3448_v16 }
 0xbaa   : > { %2587 = vmatprep.subr.bf16.mxu0 %v2956_v24 }
 0xbac   : > { %2520 = vmatmul.mubr.msk.f32.vlgmr.msra.gmra.mrb[14].mxu0 %vm695_vm2, %v3456_v19 }
 0xbad   : > { %2589 = vmatpush3.bf16.msra.mxu0 %v3338_v29  ;;  %2531 = vmatprep.mubr.msk.f32.mxu0 %vm2957_vm1, %v2958_v37  ;;  %v1326_v29 = vadd.f32 %v3381_v53, %v3427_v39 }
 0xbaf   : > { %v1330_v32 = vadd.f32 %v1326_v29, %v3358_v48 }
 0xc7a   : > { %v1751_v20 = vpop.f32.mrb[12].mxu1 }
 0xc7b   : > { %v1676_v21 = vpop.f32.mrb[12].mxu0  ;;  %v2516_v22 = vpop.f32.mrb[13].mxu1  ;;  %v1752_v51 = vadd.f32 %v3376_v52, %v1751_v20 }
 0xc7c   : > { %v2509_v23 = vpop.f32.mrb[13].mxu0  ;;  %v1677_v34 = vadd.f32 %v3381_v53, %v1676_v21 }
 0xc7d   : > { %v1756_v50 = vadd.f32 %v1752_v51, %v3418_v36 }
 0xc7e   : > { %v1681_v40 = vadd.f32 %v1677_v34, %v3410_v33 }
 0xc7f   : > { %v2521_v25 = vpop.f32.mrb[14].mxu0 }
 0xc80   : > { %v1845_v26 = vmul.f32 0.25, %v2521_v25  ;;  %v1835_v27 = vpop.f32.mrb[15].mxu0 }
 0xc81   : > { %v1844_v28 = vmul.f32 0.25, %v1835_v27 }
 0xc82   : > { %v1849_v30 = vsel %vm782_vm3, %v1845_v26, -inf }
 0xc83   : > { %1850 = vmax.xlane.f32.xlu1 %v1849_v30  ;;  %v1846_v31 = vsel %vm782_vm3, %v1844_v28, -inf }
 0xc84   : > { %1847 = vmax.xlane.f32.xlu0 %v1846_v31 }
 0xc94   : > { %2109 = vrot.lane.b32.xlu1 %v1330_v32, %s2965_s12 }
 0xc98   : > { %2113 = vrot.lane.b32.xlu1 %v1681_v40, %s2964_s30 }
 0xc9c   : > { %2125 = vrot.lane.b32.xlu1 %v1405_v41, %s2963_s7 }
 0xd10   : > { %v1851_v42 = vpop.xlane.xlu1 %1850 }
 0xd11   : > { %v1853_v43 = vsub.f32 %v1845_v26, %v1851_v42  ;;  %v1848_v39 = vpop.xlane.xlu0 %1847 }
 0xd12   : > { %v1852_v44 = vsub.f32 %v1844_v28, %v1848_v39 }
 0xd13   : > { %v1856_v48 = vmul.f32 1.442695, %v1853_v43 }
 0xd14   : > { %v1854_v45 = vmul.f32 1.442695, %v1852_v44 }
 0xd16   : > { %2717 = vpow2.f32 %v1854_v45 }
 0xd17   : > { %2719 = vpow2.f32 %v1856_v48 }
 0xd20   : > { %v2718_v47 = vpop.eup %2717 }
 0xd21   : > { %v1858_v49 = vsel %vm782_vm3, %v2718_v47, 0.0  ;;  %v2720_v38 = vpop.eup %2719 }
 0xd22   : > { %1859 = vadd.xlane.f32.xlu0 %v1858_v49  ;;  %v1861_v33 = vsel %vm782_vm3, %v2720_v38, 0.0 }
 0xd26   : > { %1862 = vadd.xlane.f32.xlu0 %v1861_v33 }
 0xd3c   : > { %1874 = vrot.lane.b32.xlu0 %v3311_v6, %s2965_s12 }
 0xd40   : > { %2121 = vrot.lane.b32.xlu0 %v3386_v60, %s2960_s29  ;;  %s3592_s29 = sld [smem:[#allocation23_spill]] }
 0xd44   : > { %2129 = vrot.lane.b32.xlu0 %v1756_v50, %s2961_s24 }
 0xd46   : > { %s3505_s10 = scalar_lea.hbm %s3592_s29, %s2337_s18 }
 0xdaf   : > { %v1860_v54 = vpop.xlane.xlu0 %1859 }
 0xdb0   : > { %2721 = vrcp.f32 %v1860_v54 }
 0xdb3   : > { %v1863_v55 = vpop.xlane.xlu0 %1862 }
 0xdb4   : > { %2723 = vrcp.f32 %v1863_v55 }
 0xdb7   : > { %v1875_v56 = vpop.permute.xlu0 %1874 }
 0xdb8   : > { %2522 = vmatprep.subr.mxu1 %v1875_v56 }
 0xdb9   : > { %2523 = vmatpush3.msra.mxu1 %v1875_v56 }
 0xdba   : > { %v2722_v57 = vpop.eup %2721  ;;  %2590 = vmatprep.subr.bf16.mxu1 %v2956_v24 }
 0xdbb   : > { %v1866_v6 = vmul.f32 %v2722_v57, %v1860_v54  ;;  %v2122_v13 = vpop.permute.xlu0 %2121 }
 0xdbd   : > { %v1868_v58 = vsub.f32 2.0, %v1866_v6 }
 0xdbe   : > { %v2724_v59 = vpop.eup %2723 }
 0xdbf   : > { %v1870_v62 = vmul.f32 %v2722_v57, %v1868_v58  ;;  %v1867_v63 = vmul.f32 %v2724_v59, %v1863_v55  ;;  %v2130_v17 = vpop.permute.xlu0 %2129 }
 0xdc1   : > { %v1872_v60 = vmul.f32 %v2718_v47, %v1870_v62  ;;  %v1869_v0 = vsub.f32 2.0, %v1867_v63 }
 0xdc3   : > { %v1871_v36 = vmul.f32 %v2724_v59, %v1869_v0  ;;  %2524 = vmatprep.mubr.msk.f32.mxu1 %vm782_vm3, %v1872_v60 }
 0xdc5   : > { %v1873_v9 = vmul.f32 %v2720_v38, %v1871_v36 }
 0xdc7   : > { %2525 = vmatmul.mubr.msk.f32.vlgmr.msra.gmra.mrb[14].mxu1 %vm782_vm3, %v1873_v9 }
 0xdc8   : > { %2592 = vmatpush3.bf16.msra.mxu1 %v3351_v46  ;;  %2538 = vmatprep.mubr.msk.f32.mxu1 %vm2957_vm1, %v2958_v37  ;;  %v2110_v46 = vpop.permute.xlu1 %2109 }
 0xdcc   : > { %v2114_v11 = vpop.permute.xlu1 %2113 }
 0xdd0   : > { %v2126_v12 = vpop.permute.xlu1 %2125 }
 0xe9a   : > { %v2526_v8 = vpop.f32.mrb[14].mxu1 }
 0xe9b   : > { %v1949_v24 = vpop.f32.mrb[15].mxu1  ;;  %2539 = vmatmul.mubr.msk.f32.vlgmr.msra.gmra.mrb[16].mxu1 %vm695_vm2, %v2526_v8 }
 0xe9c   : > { %2532 = vmatmul.mubr.msk.f32.vlgmr.msra.gmra.mrb[16].mxu0 %vm695_vm2, %v1949_v24 }
 0xf6e   : > { %v2102_v1 = vpop.f32.mrb[16].mxu1 }
 0xf6f   : > { %v2027_v2 = vpop.f32.mrb[16].mxu0  ;;  %v2540_v3 = vpop.f32.mrb[17].mxu1  ;;  %v2103_v7 = vadd.f32 %v3376_v52, %v2102_v1 }
 0xf70   : > { %v2028_v4 = vadd.f32 %v3381_v53, %v2027_v2  ;;  %v2533_v5 = vpop.f32.mrb[17].mxu0  ;;  %v2136_v53 = vsel %vm695_vm2, %v3389_v61, %v2110_v46 }
 0xf71   : > { %v2107_v37 = vadd.f32 %v2103_v7, %v3456_v19  ;;  %v2138_v52 = vsel %vm2137_vm4, %v2136_v53, %v2114_v11 }
 0xf72   : > { %v2032_v10 = vadd.f32 %v2028_v4, %v3448_v16 }
 0xf74   : > { %2117 = vrot.lane.b32.xlu1 %v2032_v10, %s2962_s19 }
 0xf78   : > { %2133 = vrot.lane.b32.xlu1 %v2107_v37, %s2959_s25 }
 0xfe6   : > { %v2118_v14 = vpop.permute.xlu1 %2117 }
 0xfe7   : > { %v2140_v15 = vsel %vm2139_vm5, %v2138_v52, %v2118_v14 }
 0xfe8   : > { %v2141_v16 = vsel %vm460_vm0, %v2140_v15, %v2122_v13 }
 0xfe9   : > { %v2143_v18 = vsel %vm2142_vm6, %v2141_v16, %v2126_v12 }
 0xfea   : > { %v2134_v19 = vpop.permute.xlu1 %2133  ;;  %v2145_v20 = vsel %vm2144_vm7, %v2143_v18, %v2130_v17 }
 0xfeb   : > { %v2147_v61 = vsel %vm2146_vm8, %v2145_v20, %v2134_v19 }
 0xfec   : > { %2148 = vst [vmem:[%s454_s26] sm:$0xff] %v2147_v61 }
 0xfed   : > { %2882 = shalt.err (!%p2879_p10)
}
 0xfee   : > { %s2883_s4 = scalar_lea.hbm %s3505_s10, 128  ;;  %s2887_s19 = scalar_lea.hbm %s3592_s29, 256 }
 0xfef   : > { %p2884_p13 = scmp.ne.s32.totalorder %s3505_s10, %s2883_s4  ;;  %p2888_p9 = scmp.lt.u32.totalorder %s3505_s10, %s3592_s29 }
 0xff0   : > { %p2889_p3 = scmp.lt.u32.totalorder %s2887_s19, %s2883_s4  ;;  %p2891_p12 = scmp.lt.u32.totalorder %s2883_s4, %s3505_s10 }
 0xff1   : > { %p2885_p5 = pnand %p2884_p13, %p3593_p1 }
 0xff2   : > { %p2890_p7 = por %p2889_p3, %p2888_p9 }
 0xff3   : > { %p2886_p11 = pneg %p2885_p5 }
 0xff4   : > { %p2892_p2 = por %p2891_p12, %p2890_p7 }
 0xff6   : > { %p2893_p4 = pnand %p2892_p2, %p2886_p11 }
 0xff8   : > { %2896 = shalt.err (!%p2893_p4)
}
 0xff9   : > { %2609 = dma.vmem_to_hbm [thread:$0]  (%p3593_p1), %s3507_s5, 128, %s3505_s10, %s2150_s17  }
 0xffa PF: > { %s3594_s12 = sld [smem:[#allocation17_spill]]  ;;  %s3595_s18 = sld [smem:[#allocation18_spill]] }
 0xffb   : > { %p3597_p8 = scmp.ge.s32.totalorder %s2947_s16, 2 }
0x1000   : > { %s2175_s26 = sand.u32 1, %s3594_s12   ;;  %p3596_p0 = scmp.ne.s32.totalorder %s3595_s18, 0 }
0x1001   : > { %s2176_s28 = scalar_lea.sflag [#allocation4], %s2175_s26 }
0x1002   : > { %p2629_p6 = pnand %p3597_p8, %p3596_p0 }
0x1004   : > { %2930 = dma.done.wait (!%p2629_p6), %s2176_s28, 128  }
0x1005   : > { %2932 = vsyncadd (!%p2629_p6), %s2176_s28, 4294967168  ;;  %s3598_s25 = smov %s3172_s13  ;;  %p27_p10 = scmp.ge.s32.totalorder %s3162_s22, 4  }
0x1006   : > { %s3599_s13 = smov %s2939_s14  ;;  %s3600_s14 = smov %s2943_s15 }
0x1007   : > { %s3601_s15 = smov %s3598_s25  ;;  %s3602_s16 = smov %s3162_s22 }
0x1008   :  { %29 = sbr.rel (!%p27_p10) target bundleno = 14 (0xe), region = 130 }
0x100f   :  { %2181 = vsyncpa [#allocation3], 1 }
0x1010   :  { %2183 = vsyncpa [#allocation3 + $0x1], 1 }
0x1011   :  { %2184 = vsyncpa [#allocation6], 1 }
0x1012   :  { %2186 = vsyncpa [#allocation6 + $0x1], 1 }
0x1013   :  { %2187 = vsyncpa [#allocation9], 1 }
0x1014   :  { %2188 = vsyncpa [#allocation4], 1 }
0x1015   :  { %2190 = vsyncpa [#allocation4 + $0x1], 1 }

</bundles_post_ra>
